<compile_context>
chip_gen: v5e
topology: v5e:2x2
jax: 0.10.0
libtpu: 0.0.40
codegen_flags: <defaults>
</compile_context>

<pallas_src>
import jax
import jax.numpy as jnp
from jax.experimental import pallas as pl
from jax.experimental.pallas import tpu as pltpu

LANE = 128


def _round_up(n, m):
    return ((n + m - 1) // m) * m


def _pad_to(a, shape):
    pads = [(0, t - s) for s, t in zip(a.shape, shape)]
    return jnp.pad(a, pads)


def _leaky_relu(x, slope=0.2):
    return jnp.where(x > 0, x, slope * x)


def fusion_kernel(x1_ref, wm1_ref, x2_ref, wm2_ref,
                  we_ref, be_ref, w1_ref, b1_ref, w2_ref, b2_ref,
                  w3_ref, b3_ref, out_ref):
    # ---- masked mean pooling ----
    # x is bf16 in VMEM (half the HBM traffic); upcast to f32 before the VALU
    # multiply (v5e has no bf16 VALU). wm already has S on the sublane axis
    # (shape (TB, S, 1)) so no lane->sublane relayout is needed.
    x1 = x1_ref[...].astype(jnp.float32)               # (TB, S, D)
    x2 = x2_ref[...].astype(jnp.float32)
    wm1 = wm1_ref[...]                                  # (TB, S, 1) f32
    wm2 = wm2_ref[...]

    pooled1 = jnp.sum(x1 * wm1, axis=1)                 # (TB, D)
    pooled2 = jnp.sum(x2 * wm2, axis=1)                 # (TB, D)
    pooled = jnp.concatenate([pooled1, pooled2], axis=-1)   # (TB, 2D)

    # ---- fused embedding projection: z = [p1|p2] @ [We1;We2] + (be1+be2) ----
    # Weight columns >= M are zero-padded, so z's lanes >= M are exactly 0.
    z = jnp.dot(pooled, we_ref[...],
                preferred_element_type=jnp.float32) + be_ref[...]        # (TB, W)

    # ---- classifier MLP (dropout = identity in eval mode) ----
    h = _leaky_relu(jnp.dot(z, w1_ref[...],
                            preferred_element_type=jnp.float32) + b1_ref[...])
    h = _leaky_relu(jnp.dot(h, w2_ref[...],
                            preferred_element_type=jnp.float32) + b2_ref[...])
    # w3/b3 are column-shifted so the 3 logits land in lanes [M, M+3), which are
    # guaranteed-zero lanes of z -> pack both outputs into one lane-dense slab.
    logits = jnp.dot(h, w3_ref[...],
                     preferred_element_type=jnp.float32) + b3_ref[...]   # (TB, W)

    out_ref[...] = z + logits


def _pick_block_b(B, S, D, out_w, budget_bytes=24 << 20):
    """Largest batch tile (multiple of 8) whose per-step pipelined footprint fits
    the budget. The budget counts double-buffered bf16 x tiles, wm tiles, the
    f32 output slab AND the in-kernel f32 temporaries (x upcast, x*wm), so it
    stays safe on v7x's 64 MiB VMEM; small/medium B collapses to one grid step."""
    bf16_in = 2 * 2 * S * D * 2       # x1+x2, 2 buffers, bf16
    wm_in = 2 * 2 * S * 4             # wm1+wm2, 2 buffers, f32
    out_rows = 2 * out_w * 4          # packed output, 2 buffers, f32
    temps = 4 * S * D * 4             # x_f32 + x*wm for both branches (headroom)
    per_row = bf16_in + wm_in + out_rows + temps
    tb = budget_bytes // max(per_row, 1)
    tb = max(8, (tb // 8) * 8)
    return min(tb, _round_up(B, 8))   # single grid step whenever it fits


def model_fusion_multilabel(x1, x2, mask1, mask2, params, *, block_b=None,
                            vmem_limit_bytes=48 << 20):
    B, S, D = x1.shape
    M = params["we1"].shape[1]

    ZP = _round_up(M, LANE)
    H1P = _round_up(32, LANE)
    H2P = _round_up(16, LANE)

    # Output packing: logits share the z slab when they fit in its zero lanes.
    if M + 3 <= ZP:
        logit_off, OUT_W = M, ZP
    else:                       # M within 2 of a multiple of 128 -> extra 128 lanes
        logit_off, OUT_W = ZP, ZP + LANE

    # --- fuse + lane-pad the weights once (outside the kernel) ---
    we = _pad_to(jnp.concatenate([params["we1"], params["we2"]], axis=0),
                 (2 * D, OUT_W))
    be = _pad_to(params["be1"] + params["be2"], (1, OUT_W))
    w1 = _pad_to(params["w1"], (OUT_W, H1P))
    b1 = _pad_to(params["b1"], (1, H1P))
    w2 = _pad_to(params["w2"], (H1P, H2P))
    b2 = _pad_to(params["b2"], (1, H2P))
    k3 = params["w3"].shape[0]
    w3 = jnp.zeros((H2P, OUT_W), jnp.float32).at[:k3, logit_off:logit_off + 3] \
        .set(params["w3"])
    b3 = jnp.zeros((1, OUT_W), jnp.float32).at[:, logit_off:logit_off + 3] \
        .set(params["b3"])

    # --- pooling weights precomputed (exact divide), shaped (B, S, 1) so S is
    #     already on the sublane axis; removes in-kernel relayout + reduce of mask.
    def pool_w(mask):
        denom = jnp.maximum(jnp.sum(mask, axis=1, keepdims=True), 1.0)
        return (mask / denom)[:, :, None].astype(jnp.float32)

    wm1 = pool_w(mask1)
    wm2 = pool_w(mask2)

    # --- bf16 inputs (dominant HBM stream), f32 math inside the kernel ---
    x1b = x1.astype(jnp.bfloat16)
    x2b = x2.astype(jnp.bfloat16)

    # --- batch tiling (single step for small B; zero-pad ragged batches) ---
    if block_b is None:
        tb = _pick_block_b(B, S, D, OUT_W)
    else:
        tb = min(_round_up(max(block_b, 1), 8), _round_up(B, 8))
    B_pad = _round_up(B, tb)
    nb = B_pad // tb
    if B_pad != B:
        pad = B_pad - B
        x1b = jnp.pad(x1b, ((0, pad), (0, 0), (0, 0)))
        x2b = jnp.pad(x2b, ((0, pad), (0, 0), (0, 0)))
        wm1 = jnp.pad(wm1, ((0, pad), (0, 0), (0, 0)))
        wm2 = jnp.pad(wm2, ((0, pad), (0, 0), (0, 0)))

    args = (x1b, wm1, x2b, wm2, we, be, w1, b1, w2, b2, w3, b3)

    in_specs = [
        pl.BlockSpec((tb, S, D), lambda i: (i, 0, 0)),     # x1 (bf16)
        pl.BlockSpec((tb, S, 1), lambda i: (i, 0, 0)),     # wm1
        pl.BlockSpec((tb, S, D), lambda i: (i, 0, 0)),     # x2 (bf16)
        pl.BlockSpec((tb, S, 1), lambda i: (i, 0, 0)),     # wm2
        pl.BlockSpec((2 * D, OUT_W), lambda i: (0, 0)),    # fused embedding W (resident)
        pl.BlockSpec((1, OUT_W),     lambda i: (0, 0)),
        pl.BlockSpec((OUT_W, H1P),   lambda i: (0, 0)),
        pl.BlockSpec((1, H1P),       lambda i: (0, 0)),
        pl.BlockSpec((H1P, H2P),     lambda i: (0, 0)),
        pl.BlockSpec((1, H2P),       lambda i: (0, 0)),
        pl.BlockSpec((H2P, OUT_W),   lambda i: (0, 0)),    # w3, column-shifted to M:M+3
        pl.BlockSpec((1, OUT_W),     lambda i: (0, 0)),
    ]
    out_specs = pl.BlockSpec((tb, OUT_W), lambda i: (i, 0))
    out_shape = jax.ShapeDtypeStruct((B_pad, OUT_W), jnp.float32)

    flops = 2 * B_pad * (2 * S * D + 2 * D * OUT_W + OUT_W * H1P
                         + H1P * H2P + H2P * OUT_W)
    bytes_accessed = (2 * B_pad * S * D * 2            # bf16 x1/x2
                      + 2 * B_pad * S * 4              # wm1/wm2
                      + B_pad * OUT_W * 4              # packed output
                      + 4 * (2 * D * OUT_W + OUT_W * H1P + H1P * H2P
                             + H2P * OUT_W + OUT_W + H1P + H2P + OUT_W))
    cost = pl.CostEstimate(flops=flops, transcendentals=0,
                           bytes_accessed=bytes_accessed)

    out = pl.pallas_call(
        fusion_kernel,
        out_shape=out_shape,
        grid_spec=pltpu.PrefetchScalarGridSpec(
            num_scalar_prefetch=0,
            grid=(nb,),
            in_specs=in_specs,
            out_specs=out_specs,
        ),
        compiler_params=pltpu.CompilerParams(
            dimension_semantics=("parallel",),
            vmem_limit_bytes=int(vmem_limit_bytes)),
        cost_estimate=cost,
    )(*args)

    z = out[:B, :M]
    logits = out[:B, logit_off:logit_off + 3]
    return z, logits


def init_params(key, D, M):
    ks = jax.random.split(key, 5)

    def lin(k, fan_in, fan_out):
        bound = 1.0 / jnp.sqrt(fan_in)
        kw, kb = jax.random.split(k)
        w = jax.random.uniform(kw, (fan_in, fan_out), jnp.float32, -bound, bound)
        b = jax.random.uniform(kb, (1, fan_out), jnp.float32, -bound, bound)
        return w, b

    we1, be1 = lin(ks[0], D, M)
    we2, be2 = lin(ks[1], D, M)
    w1, b1 = lin(ks[2], M, 32)
    w2, b2 = lin(ks[3], 32, 16)
    w3, b3 = lin(ks[4], 16, 3)
    return dict(we1=we1, be1=be1, we2=we2, be2=be2,
                w1=w1, b1=b1, w2=w2, b2=b2, w3=w3, b3=b3)


def reference(x1, x2, m1, m2, p):
    def emb(x, m, w, b):
        denom = jnp.maximum(jnp.sum(m, axis=1, keepdims=True), 1.0)
        pooled = jnp.sum(x * m[:, :, None], axis=1) / denom
        return pooled @ w + b

    z = emb(x1, m1, p["we1"], p["be1"]) + emb(x2, m2, p["we2"], p["be2"])
    h = jax.nn.leaky_relu(z @ p["w1"] + p["b1"], 0.2)
    h = jax.nn.leaky_relu(h @ p["w2"] + p["b2"], 0.2)
    return z, h @ p["w3"] + p["b3"]


if __name__ == "__main__":
    B, S, D, M = 32, 8, 16, 32   # small shapes; M matches Linear(M, 32) input

    key = jax.random.PRNGKey(0)
    k_x1, k_x2, k_m1, k_m2, k_p = jax.random.split(key, 5)

    x1 = jax.random.normal(k_x1, (B, S, D), jnp.float32)
    x2 = jax.random.normal(k_x2, (B, S, D), jnp.float32)
    mask1 = (jax.random.uniform(k_m1, (B, S)) > 0.3).astype(jnp.float32)
    mask2 = (jax.random.uniform(k_m2, (B, S)) > 0.3).astype(jnp.float32)

    params = init_params(k_p, D, M)

    z_ref, logits_ref = reference(x1, x2, mask1, mask2, params)

    # Default path: auto tile picker -> single grid step for this small batch
    # (no per-step pipeline overhead at demo scale).
    z, logits = model_fusion_multilabel(x1, x2, mask1, mask2, params)
    z, logits = jax.block_until_ready((z, logits))

    assert z.shape == (B, M) and logits.shape == (B, 3)
    assert jnp.allclose(z, z_ref, atol=1e-2, rtol=1e-2)
    assert jnp.allclose(logits, logits_ref, atol=1e-2, rtol=1e-2)

    # Also exercise the multi-step tiled path (correctness check only; the perf
    # config above uses a single step for small B).
    z2, logits2 = model_fusion_multilabel(x1, x2, mask1, mask2, params, block_b=16)
    z2, logits2 = jax.block_until_ready((z2, logits2))
    assert jnp.allclose(z2, z_ref, atol=1e-2, rtol=1e-2)
    assert jnp.allclose(logits2, logits_ref, atol=1e-2, rtol=1e-2)

    print("KERNEL_OK")
</pallas_src>

<mosaic_0001>
module attributes {stable_mosaic.version = 11 : i64} {
  func.func @fusion_kernel(%arg0: i32, %arg1: memref<32x8x16xbf16, #tpu.memory_space<vmem>>, %arg2: memref<32x8x1xf32, #tpu.memory_space<vmem>>, %arg3: memref<32x8x16xbf16, #tpu.memory_space<vmem>>, %arg4: memref<32x8x1xf32, #tpu.memory_space<vmem>>, %arg5: memref<32x128xf32, #tpu.memory_space<vmem>>, %arg6: memref<1x128xf32, #tpu.memory_space<vmem>>, %arg7: memref<128x128xf32, #tpu.memory_space<vmem>>, %arg8: memref<1x128xf32, #tpu.memory_space<vmem>>, %arg9: memref<128x128xf32, #tpu.memory_space<vmem>>, %arg10: memref<1x128xf32, #tpu.memory_space<vmem>>, %arg11: memref<128x128xf32, #tpu.memory_space<vmem>>, %arg12: memref<1x128xf32, #tpu.memory_space<vmem>>, %arg13: memref<32x128xf32, #tpu.memory_space<vmem>>) attributes {dimension_semantics = [#tpu.dimension_semantics<parallel>], iteration_bounds = array<i64: 1>, scalar_prefetch = 0 : i64, scratch_operands = 0 : i64, tpu.core_type = #tpu.core_type<tc>, window_params = [{transform_indices = @transform_0, window_bounds = array<i64: 32, 8, 16>}, {transform_indices = @transform_1, window_bounds = array<i64: 32, 8, 1>}, {transform_indices = @transform_2, window_bounds = array<i64: 32, 8, 16>}, {transform_indices = @transform_3, window_bounds = array<i64: 32, 8, 1>}, {pipeline_mode = #tpu.pipeline_mode<synchronous>, transform_indices = @transform_4, window_bounds = array<i64: 32, 128>}, {pipeline_mode = #tpu.pipeline_mode<synchronous>, transform_indices = @transform_5, window_bounds = array<i64: 1, 128>}, {pipeline_mode = #tpu.pipeline_mode<synchronous>, transform_indices = @transform_6, window_bounds = array<i64: 128, 128>}, {pipeline_mode = #tpu.pipeline_mode<synchronous>, transform_indices = @transform_7, window_bounds = array<i64: 1, 128>}, {pipeline_mode = #tpu.pipeline_mode<synchronous>, transform_indices = @transform_8, window_bounds = array<i64: 128, 128>}, {pipeline_mode = #tpu.pipeline_mode<synchronous>, transform_indices = @transform_9, window_bounds = array<i64: 1, 128>}, {pipeline_mode = #tpu.pipeline_mode<synchronous>, transform_indices = @transform_10, window_bounds = array<i64: 128, 128>}, {pipeline_mode = #tpu.pipeline_mode<synchronous>, transform_indices = @transform_11, window_bounds = array<i64: 1, 128>}, {transform_indices = @transform_12, window_bounds = array<i64: 32, 128>}]} {
    %c0 = arith.constant 0 : index
    %c0_0 = arith.constant 0 : index
    %c0_1 = arith.constant 0 : index
    %0 = vector.load %arg1[%c0, %c0_0, %c0_1] : memref<32x8x16xbf16, #tpu.memory_space<vmem>>, vector<32x8x16xbf16>
    %1 = arith.extf %0 : vector<32x8x16xbf16> to vector<32x8x16xf32>
    %c0_2 = arith.constant 0 : index
    %c0_3 = arith.constant 0 : index
    %c0_4 = arith.constant 0 : index
    %2 = vector.load %arg3[%c0_2, %c0_3, %c0_4] : memref<32x8x16xbf16, #tpu.memory_space<vmem>>, vector<32x8x16xbf16>
    %3 = arith.extf %2 : vector<32x8x16xbf16> to vector<32x8x16xf32>
    %c0_5 = arith.constant 0 : index
    %c0_6 = arith.constant 0 : index
    %c0_7 = arith.constant 0 : index
    %4 = vector.load %arg2[%c0_5, %c0_6, %c0_7] : memref<32x8x1xf32, #tpu.memory_space<vmem>>, vector<32x8x1xf32>
    %c0_8 = arith.constant 0 : index
    %c0_9 = arith.constant 0 : index
    %c0_10 = arith.constant 0 : index
    %5 = vector.load %arg4[%c0_8, %c0_9, %c0_10] : memref<32x8x1xf32, #tpu.memory_space<vmem>>, vector<32x8x1xf32>
    %6 = vector.broadcast %4 : vector<32x8x1xf32> to vector<32x8x16xf32>
    %7 = arith.mulf %1, %6 : vector<32x8x16xf32>
    %cst = arith.constant dense<0.000000e+00> : vector<32x16xf32>
    %8 = vector.multi_reduction <add>, %7, %cst [1] : vector<32x8x16xf32> to vector<32x16xf32>
    %9 = vector.broadcast %5 : vector<32x8x1xf32> to vector<32x8x16xf32>
    %10 = arith.mulf %3, %9 : vector<32x8x16xf32>
    %cst_11 = arith.constant dense<0.000000e+00> : vector<32x16xf32>
    %11 = vector.multi_reduction <add>, %10, %cst_11 [1] : vector<32x8x16xf32> to vector<32x16xf32>
    %12 = tpu.concatenate %8, %11 in 1 : vector<32x16xf32>, vector<32x16xf32> -> vector<32x32xf32>
    %c0_12 = arith.constant 0 : index
    %c0_13 = arith.constant 0 : index
    %13 = vector.load %arg5[%c0_12, %c0_13] : memref<32x128xf32, #tpu.memory_space<vmem>>, vector<32x128xf32>
    %cst_14 = arith.constant dense<0.000000e+00> : vector<32x128xf32>
    %14 = tpu.matmul %12, %13, %cst_14 {dimension_numbers = #tpu.dot_dimension_numbers<[1], [0], [0], [1], [0, 0, 1, 1], [], []>} : vector<32x32xf32>, vector<32x128xf32>, vector<32x128xf32> -> vector<32x128xf32>
    %c0_15 = arith.constant 0 : index
    %c0_16 = arith.constant 0 : index
    %15 = vector.load %arg6[%c0_15, %c0_16] : memref<1x128xf32, #tpu.memory_space<vmem>>, vector<1x128xf32>
    %16 = vector.broadcast %15 : vector<1x128xf32> to vector<32x128xf32>
    %17 = arith.addf %14, %16 : vector<32x128xf32>
    %c0_17 = arith.constant 0 : index
    %c0_18 = arith.constant 0 : index
    %18 = vector.load %arg7[%c0_17, %c0_18] : memref<128x128xf32, #tpu.memory_space<vmem>>, vector<128x128xf32>
    %cst_19 = arith.constant dense<0.000000e+00> : vector<32x128xf32>
    %19 = tpu.matmul %17, %18, %cst_19 {dimension_numbers = #tpu.dot_dimension_numbers<[1], [0], [0], [1], [0, 0, 1, 1], [], []>} : vector<32x128xf32>, vector<128x128xf32>, vector<32x128xf32> -> vector<32x128xf32>
    %c0_20 = arith.constant 0 : index
    %c0_21 = arith.constant 0 : index
    %20 = vector.load %arg8[%c0_20, %c0_21] : memref<1x128xf32, #tpu.memory_space<vmem>>, vector<1x128xf32>
    %21 = vector.broadcast %20 : vector<1x128xf32> to vector<32x128xf32>
    %22 = arith.addf %19, %21 : vector<32x128xf32>
    %cst_22 = arith.constant 0.000000e+00 : f32
    %23 = vector.broadcast %cst_22 : f32 to vector<32x128xf32>
    %24 = arith.cmpf ogt, %22, %23 : vector<32x128xf32>
    %cst_23 = arith.constant 2.000000e-01 : f32
    %25 = vector.broadcast %cst_23 : f32 to vector<32x128xf32>
    %26 = arith.mulf %25, %22 : vector<32x128xf32>
    %27 = arith.select %24, %22, %26 : vector<32x128xi1>, vector<32x128xf32>
    %c0_24 = arith.constant 0 : index
    %c0_25 = arith.constant 0 : index
    %28 = vector.load %arg9[%c0_24, %c0_25] : memref<128x128xf32, #tpu.memory_space<vmem>>, vector<128x128xf32>
    %cst_26 = arith.constant dense<0.000000e+00> : vector<32x128xf32>
    %29 = tpu.matmul %27, %28, %cst_26 {dimension_numbers = #tpu.dot_dimension_numbers<[1], [0], [0], [1], [0, 0, 1, 1], [], []>} : vector<32x128xf32>, vector<128x128xf32>, vector<32x128xf32> -> vector<32x128xf32>
    %c0_27 = arith.constant 0 : index
    %c0_28 = arith.constant 0 : index
    %30 = vector.load %arg10[%c0_27, %c0_28] : memref<1x128xf32, #tpu.memory_space<vmem>>, vector<1x128xf32>
    %31 = vector.broadcast %30 : vector<1x128xf32> to vector<32x128xf32>
    %32 = arith.addf %29, %31 : vector<32x128xf32>
    %cst_29 = arith.constant 0.000000e+00 : f32
    %33 = vector.broadcast %cst_29 : f32 to vector<32x128xf32>
    %34 = arith.cmpf ogt, %32, %33 : vector<32x128xf32>
    %cst_30 = arith.constant 2.000000e-01 : f32
    %35 = vector.broadcast %cst_30 : f32 to vector<32x128xf32>
    %36 = arith.mulf %35, %32 : vector<32x128xf32>
    %37 = arith.select %34, %32, %36 : vector<32x128xi1>, vector<32x128xf32>
    %c0_31 = arith.constant 0 : index
    %c0_32 = arith.constant 0 : index
    %38 = vector.load %arg11[%c0_31, %c0_32] : memref<128x128xf32, #tpu.memory_space<vmem>>, vector<128x128xf32>
    %cst_33 = arith.constant dense<0.000000e+00> : vector<32x128xf32>
    %39 = tpu.matmul %37, %38, %cst_33 {dimension_numbers = #tpu.dot_dimension_numbers<[1], [0], [0], [1], [0, 0, 1, 1], [], []>} : vector<32x128xf32>, vector<128x128xf32>, vector<32x128xf32> -> vector<32x128xf32>
    %c0_34 = arith.constant 0 : index
    %c0_35 = arith.constant 0 : index
    %40 = vector.load %arg12[%c0_34, %c0_35] : memref<1x128xf32, #tpu.memory_space<vmem>>, vector<1x128xf32>
    %41 = vector.broadcast %40 : vector<1x128xf32> to vector<32x128xf32>
    %42 = arith.addf %39, %41 : vector<32x128xf32>
    %43 = arith.addf %17, %42 : vector<32x128xf32>
    %c0_36 = arith.constant 0 : index
    %c0_37 = arith.constant 0 : index
    %44 = vector.load %arg13[%c0_36, %c0_37] : memref<32x128xf32, #tpu.memory_space<vmem>>, vector<32x128xf32>
    tpu.vector_store %arg13[%c0_36, %c0_37], %43 {strides = array<i32>} : memref<32x128xf32, #tpu.memory_space<vmem>>, vector<32x128xf32>,
    return
  }
  func.func @transform_0(%arg0: i32) -> (i32, i32, i32) {
    %c0_i32 = arith.constant 0 : i32
    %c0_i32_0 = arith.constant 0 : i32
    %c0_i32_1 = arith.constant 0 : i32
    return %arg0, %c0_i32, %c0_i32_0 : i32, i32, i32
  }
  func.func @transform_1(%arg0: i32) -> (i32, i32, i32) {
    %c0_i32 = arith.constant 0 : i32
    %c0_i32_0 = arith.constant 0 : i32
    %c0_i32_1 = arith.constant 0 : i32
    return %arg0, %c0_i32, %c0_i32_0 : i32, i32, i32
  }
  func.func @transform_2(%arg0: i32) -> (i32, i32, i32) {
    %c0_i32 = arith.constant 0 : i32
    %c0_i32_0 = arith.constant 0 : i32
    %c0_i32_1 = arith.constant 0 : i32
    return %arg0, %c0_i32, %c0_i32_0 : i32, i32, i32
  }
  func.func @transform_3(%arg0: i32) -> (i32, i32, i32) {
    %c0_i32 = arith.constant 0 : i32
    %c0_i32_0 = arith.constant 0 : i32
    %c0_i32_1 = arith.constant 0 : i32
    return %arg0, %c0_i32, %c0_i32_0 : i32, i32, i32
  }
  func.func @transform_4(%arg0: i32) -> (i32, i32) {
    %c0_i32 = arith.constant 0 : i32
    %c0_i32_0 = arith.constant 0 : i32
    %c0_i32_1 = arith.constant 0 : i32
    return %c0_i32, %c0_i32_0 : i32, i32
  }
  func.func @transform_5(%arg0: i32) -> (i32, i32) {
    %c0_i32 = arith.constant 0 : i32
    %c0_i32_0 = arith.constant 0 : i32
    %c0_i32_1 = arith.constant 0 : i32
    return %c0_i32, %c0_i32_0 : i32, i32
  }
  func.func @transform_6(%arg0: i32) -> (i32, i32) {
    %c0_i32 = arith.constant 0 : i32
    %c0_i32_0 = arith.constant 0 : i32
    %c0_i32_1 = arith.constant 0 : i32
    return %c0_i32, %c0_i32_0 : i32, i32
  }
  func.func @transform_7(%arg0: i32) -> (i32, i32) {
    %c0_i32 = arith.constant 0 : i32
    %c0_i32_0 = arith.constant 0 : i32
    %c0_i32_1 = arith.constant 0 : i32
    return %c0_i32, %c0_i32_0 : i32, i32
  }
  func.func @transform_8(%arg0: i32) -> (i32, i32) {
    %c0_i32 = arith.constant 0 : i32
    %c0_i32_0 = arith.constant 0 : i32
    %c0_i32_1 = arith.constant 0 : i32
    return %c0_i32, %c0_i32_0 : i32, i32
  }
  func.func @transform_9(%arg0: i32) -> (i32, i32) {
    %c0_i32 = arith.constant 0 : i32
    %c0_i32_0 = arith.constant 0 : i32
    %c0_i32_1 = arith.constant 0 : i32
    return %c0_i32, %c0_i32_0 : i32, i32
  }
  func.func @transform_10(%arg0: i32) -> (i32, i32) {
    %c0_i32 = arith.constant 0 : i32
    %c0_i32_0 = arith.constant 0 : i32
    %c0_i32_1 = arith.constant 0 : i32
    return %c0_i32, %c0_i32_0 : i32, i32
  }
  func.func @transform_11(%arg0: i32) -> (i32, i32) {
    %c0_i32 = arith.constant 0 : i32
    %c0_i32_0 = arith.constant 0 : i32
    %c0_i32_1 = arith.constant 0 : i32
    return %c0_i32, %c0_i32_0 : i32, i32
  }
  func.func @transform_12(%arg0: i32) -> (i32, i32) {
    %c0_i32 = arith.constant 0 : i32
    %c0_i32_0 = arith.constant 0 : i32
    return %arg0, %c0_i32 : i32, i32
  }
}

</mosaic_0001>

<bundles_post_ra>
// kernel: tpu_custom_call.1
= control target key start
LH: loop header
LB: loop body
LE: loop exit
PB: predicated region body
PF: predicated region fallthrough
CT: control target
= control target key end

     0   :  { %v1661_v3 = vmov 0   ;;  %s2436_s0 = inlined_call_operand.vmem [shape: bf16[32,8,16], index: 0, kind: input, shape index: {}]   ;;  %s2437_s1 = inlined_call_operand.vmem [shape: f32[32,8,1], index: 1, kind: input, shape index: {}]   ;;  %s2438_s2 = inlined_call_operand.vmem [shape: bf16[32,8,16], index: 2, kind: input, shape index: {}]   ;;  %s2439_s3 = inlined_call_operand.vmem [shape: f32[32,8,1], index: 3, kind: input, shape index: {}]   ;;  %s2440_s4 = inlined_call_operand.vmem [shape: f32[32,128], index: 4, kind: input, shape index: {}]   ;;  %s2441_s5 = inlined_call_operand.vmem [shape: f32[1,128], index: 5, kind: input, shape index: {}]   ;;  %s2442_s6 = inlined_call_operand.vmem [shape: f32[128,128], index: 6, kind: input, shape index: {}]   ;;  %s2443_s7 = inlined_call_operand.vmem [shape: f32[1,128], index: 7, kind: input, shape index: {}]   ;;  %s2444_s8 = inlined_call_operand.vmem [shape: f32[128,128], index: 8, kind: input, shape index: {}]   ;;  %s2445_s9 = inlined_call_operand.vmem [shape: f32[1,128], index: 9, kind: input, shape index: {}]   ;;  %s2446_s10 = inlined_call_operand.vmem [shape: f32[128,128], index: 10, kind: input, shape index: {}]   ;;  %s2447_s11 = inlined_call_operand.vmem [shape: f32[1,128], index: 11, kind: input, shape index: {}]   ;;  %s2448_s12 = inlined_call_operand.hbm [shape: f32[32,128], index: 12, kind: output, shape index: {}]  }
   0x1   :  { %v206_v0 = vld [vmem:[%s2439_s3 + $0x20] sm:$0xff]  ;;  %v204_v1 = vld [vmem:[%s2439_s3 + $0x10] sm:$0xff]  ;;  %1630 = vset.pattern.permute.xlu2 %v1661_v3  ;;  %1629 = vset.pattern.permute.xlu1 %v1661_v3 }
   0x2   :  { %v202_v2 = vld [vmem:[%s2439_s3] sm:$0xff]  ;;  %1628 = vset.pattern.permute.xlu0 %v1661_v3  ;;  %673 = vperm.xlu2 %1630, %v206_v0  }
   0x3   :  { %663 = vperm.xlu1 %1629, %v204_v1   ;;  %653 = vperm.xlu0 %1628, %v202_v2  }
   0x4   :  { %17 = vsyncpa [#allocation3], 0  ;;  %v207_v4 = vld [vmem:[%s2439_s3 + $0x28] sm:$0xff]  ;;  %v205_v5 = vld [vmem:[%s2439_s3 + $0x18] sm:$0xff]  ;;  %vm426_vm0 = vcmask 130048   ;;  %vm1099_vm1 = vcmask 1041409  }
   0x5   :  { %v203_v6 = vld [vmem:[%s2439_s3 + $0x8] sm:$0xff]  ;;  %v210_v7 = vld [vmem:[%s2439_s3 + $0x40] sm:$0xff]  ;;  %v209_v8 = vld [vmem:[%s2439_s3 + $0x38] sm:$0xff]  ;;  %vm1101_vm2 = vcmask 1042434   ;;  %vm1103_vm3 = vcmask 1043459   ;;  %vm1105_vm4 = vcmask 1044484  }
   0x6   :  { %v208_v9 = vld [vmem:[%s2439_s3 + $0x30] sm:$0xff]  ;;  %v213_v10 = vld [vmem:[%s2439_s3 + $0x58] sm:$0xff]  ;;  %v211_v12 = vld [vmem:[%s2439_s3 + $0x48] sm:$0xff]  ;;  %vm1107_vm5 = vcmask 1045509   ;;  %vm1109_vm6 = vcmask 1046534   ;;  %vm1111_vm7 = vcmask 1047559  }
   0x7   :  { %v212_v11 = vld [vmem:[%s2439_s3 + $0x50] sm:$0xff]  ;;  %v215_v14 = vld [vmem:[%s2439_s3 + $0x68] sm:$0xff]  ;;  %v214_v15 = vld [vmem:[%s2439_s3 + $0x60] sm:$0xff]  ;;  %s1662_s23 = smov 16   ;;  %vm1222_vm8 = vcmask 261120   ;;  %s1664_s14 = smov 128  }
   0x8   :  { %v216_v13 = vld [vmem:[%s2439_s3 + $0x70] sm:$0xff]  ;;  %v219_v16 = vld [vmem:[%s2439_s3 + $0x88] sm:$0xff]  ;;  %v218_v17 = vld [vmem:[%s2439_s3 + $0x80] sm:$0xff]  ;;  %s1665_s15 = smov 8  }
   0x9   :  { %v217_v18 = vld [vmem:[%s2439_s3 + $0x78] sm:$0xff]  ;;  %v222_v19 = vld [vmem:[%s2439_s3 + $0xa0] sm:$0xff]  ;;  %v220_v21 = vld [vmem:[%s2439_s3 + $0x90] sm:$0xff] }
   0xa   :  { %678 = vperm.xlu2 %1630, %v207_v4   ;;  %v221_v20 = vld [vmem:[%s2439_s3 + $0x98] sm:$0xff]  ;;  %v224_v23 = vld [vmem:[%s2439_s3 + $0xb0] sm:$0xff]  ;;  %v223_v24 = vld [vmem:[%s2439_s3 + $0xa8] sm:$0xff] }
   0xb   :  { %668 = vperm.xlu1 %1629, %v205_v5   ;;  %658 = vperm.xlu0 %1628, %v203_v6   ;;  %v225_v22 = vld [vmem:[%s2439_s3 + $0xb8] sm:$0xff]  ;;  %v228_v25 = vld [vmem:[%s2439_s3 + $0xd0] sm:$0xff]  ;;  %v227_v26 = vld [vmem:[%s2439_s3 + $0xc8] sm:$0xff] }
   0xc   :  { %v226_v27 = vld [vmem:[%s2439_s3 + $0xc0] sm:$0xff]  ;;  %v231_v28 = vld [vmem:[%s2439_s3 + $0xe8] sm:$0xff]  ;;  %v229_v30 = vld [vmem:[%s2439_s3 + $0xd8] sm:$0xff] }
   0xd   :  { %v230_v29 = vld [vmem:[%s2439_s3 + $0xe0] sm:$0xff]  ;;  %v233_v32 = vld [vmem:[%s2439_s3 + $0xf8] sm:$0xff]  ;;  %v232_v33 = vld [vmem:[%s2439_s3 + $0xf0] sm:$0xff] }
   0xe   :  { %v170_v31 = vld [vmem:[%s2437_s1] sm:$0xff]  ;;  %v173_v34 = vld [vmem:[%s2437_s1 + $0x18] sm:$0xff]  ;;  %v172_v35 = vld [vmem:[%s2437_s1 + $0x10] sm:$0xff] }
   0xf   :  { %v171_v36 = vld [vmem:[%s2437_s1 + $0x8] sm:$0xff]  ;;  %v176_v38 = vld [vmem:[%s2437_s1 + $0x30] sm:$0xff]  ;;  %v174_v40 = vld [vmem:[%s2437_s1 + $0x20] sm:$0xff] }
  0x10   :  { %v175_v39 = vld [vmem:[%s2437_s1 + $0x28] sm:$0xff]  ;;  %v1609_v41 = vld [vmem:[%s2438_s2 + $0x10] sm:$0xff]   ;;  %v178_v46 = vld [vmem:[%s2437_s1 + $0x40] sm:$0xff] }
  0x11   :  { %v1539_v42 = vunpack.c.l.bf16 %v1609_v41  ;;  %v179_v44 = vld [vmem:[%s2437_s1 + $0x48] sm:$0xff]  ;;  %v177_v47 = vld [vmem:[%s2437_s1 + $0x38] sm:$0xff]  ;;  %v1540_v48 = vunpack.c.h.bf16 %v1609_v41  ;;  %v182_v53 = vld [vmem:[%s2437_s1 + $0x60] sm:$0xff] }
  0x12   :  { %693 = vperm.xlu2 %1630, %v210_v7   ;;  %v1608_v54 = vld [vmem:[%s2438_s2 + $0x8] sm:$0xff]   ;;  %v1530_v55 = vld [vmem:[%s2438_s2] sm:$0xff]   ;;  %v181_v56 = vld [vmem:[%s2437_s1 + $0x58] sm:$0xff] }
  0x13   :  { %688 = vperm.xlu1 %1629, %v209_v8   ;;  %683 = vperm.xlu0 %1628, %v208_v9   ;;  %v180_v57 = vld [vmem:[%s2437_s1 + $0x50] sm:$0xff]  ;;  %v1535_v58 = vunpack.c.l.bf16 %v1608_v54  ;;  %v1531_v59 = vunpack.c.l.bf16 %v1530_v55  ;;  %v1880_v63 = vld [vmem:[%s2438_s2 + $0x20] sm:$0xff]   ;;  %v185_v6 = vld [vmem:[%s2437_s1 + $0x78] sm:$0xff] }
  0x14   :  { %v1547_v7 = vunpack.c.l.bf16 %v1880_v63 }
  0x1a   :  { %708 = vperm.xlu2 %1630, %v213_v10   ;;  %v184_v10 = vld [vmem:[%s2437_s1 + $0x70] sm:$0xff] }
  0x1b   :  { %703 = vperm.xlu1 %1629, %v212_v11   ;;  %698 = vperm.xlu0 %1628, %v211_v12   ;;  %v183_v11 = vld [vmem:[%s2437_s1 + $0x68] sm:$0xff] }
  0x22   :  { %723 = vperm.xlu2 %1630, %v216_v13  }
  0x23   :  { %718 = vperm.xlu1 %1629, %v215_v14   ;;  %713 = vperm.xlu0 %1628, %v214_v15   ;;  %v1536_v15 = vunpack.c.h.bf16 %v1608_v54 }
  0x2a   :  { %738 = vperm.xlu2 %1630, %v219_v16   ;;  %v1532_v16 = vunpack.c.h.bf16 %v1530_v55 }
  0x2b   :  { %733 = vperm.xlu1 %1629, %v218_v17   ;;  %728 = vperm.xlu0 %1628, %v217_v18  }
  0x32   :  { %753 = vperm.xlu2 %1630, %v222_v19  }
  0x33   :  { %748 = vperm.xlu1 %1629, %v221_v20   ;;  %743 = vperm.xlu0 %1628, %v220_v21   ;;  %v1897_v20 = vld [vmem:[%s2438_s2 + $0x28] sm:$0xff]  }
  0x3a   :  { %768 = vperm.xlu2 %1630, %v225_v22  }
  0x3b   :  { %763 = vperm.xlu1 %1629, %v224_v23   ;;  %758 = vperm.xlu0 %1628, %v223_v24  }
  0x42   :  { %783 = vperm.xlu2 %1630, %v228_v25  }
  0x43   :  { %778 = vperm.xlu1 %1629, %v227_v26   ;;  %773 = vperm.xlu0 %1628, %v226_v27   ;;  %v1904_v26 = vld [vmem:[%s2438_s2 + $0x38] sm:$0xff]  }
  0x4a   :  { %798 = vperm.xlu2 %1630, %v231_v28  }
  0x4b   :  { %793 = vperm.xlu1 %1629, %v230_v29   ;;  %788 = vperm.xlu0 %1628, %v229_v30   ;;  %v1552_v30 = vunpack.c.h.bf16 %v1897_v20 }
  0x52   :  { %236 = vperm.xlu2 %1630, %v170_v31  }
  0x53   :  { %808 = vperm.xlu1 %1629, %v233_v32   ;;  %803 = vperm.xlu0 %1628, %v232_v33   ;;  %v188_v32 = vld [vmem:[%s2437_s1 + $0x90] sm:$0xff]  ;;  %v1913_v33 = vld [vmem:[%s2438_s2 + $0x40] sm:$0xff]  }
  0x5a   :  { %251 = vperm.xlu2 %1630, %v173_v34   ;;  %v1610_v34 = vld [vmem:[%s2438_s2 + $0x18] sm:$0xff]  }
  0x5b   :  { %246 = vperm.xlu1 %1629, %v172_v35   ;;  %241 = vperm.xlu0 %1628, %v171_v36  }
  0x5c   :  { %v674_v37 = vpop.permute.xlu2 %673 }
  0x5d   :  { %v815_v45 = vmul.f32 %v1539_v42, %v674_v37 }
  0x5f   :  { %v871_v49 = vsel %vm426_vm0, %v815_v45, 0.0  ;;  %v1564_v45 = vunpack.c.h.bf16 %v1913_v33 }
  0x60   :  { %v872_v51 = vrot.slane %v871_v49, 4 }
  0x62   :  { %266 = vperm.xlu2 %1630, %v176_v38   ;;  %v873_v60 = vadd.f32 %v872_v51, %v871_v49 }
  0x63   :  { %261 = vperm.xlu1 %1629, %v175_v39   ;;  %256 = vperm.xlu0 %1628, %v174_v40   ;;  %v187_v39 = vld [vmem:[%s2437_s1 + $0x88] sm:$0xff]  ;;  %v1559_v40 = vunpack.c.l.bf16 %v1904_v26 }
  0x64   :  { %v679_v43 = vpop.permute.xlu2 %678  ;;  %v874_v5 = vrot.slane %v873_v60, 2 }
  0x65   :  { %v816_v52 = vmul.f32 %v1540_v48, %v679_v43  ;;  %v186_v43 = vld [vmem:[%s2437_s1 + $0x80] sm:$0xff] }
  0x66   :  { %v875_v17 = vadd.f32 %v874_v5, %v873_v60  ;;  %v1551_v60 = vunpack.c.l.bf16 %v1897_v20 }
  0x67   :  { %v878_v61 = vsel %vm426_vm0, %v816_v52, 0.0 }
  0x68   :  { %v879_v2 = vrot.slane %v878_v61, 4  ;;  %v876_v29 = vrot.slane %v875_v17, 1 }
  0x6a   :  { %281 = vperm.xlu2 %1630, %v179_v44   ;;  %v880_v14 = vadd.f32 %v879_v2, %v878_v61  ;;  %v1929_v52 = vadd.f32 %v876_v29, %v875_v17  ;;  %v1548_v61 = vunpack.c.h.bf16 %v1880_v63 }
  0x6b   :  { %276 = vperm.xlu1 %1629, %v178_v46   ;;  %271 = vperm.xlu0 %1628, %v177_v47   ;;  %v1544_v46 = vunpack.c.h.bf16 %v1610_v34  ;;  %v1543_v47 = vunpack.c.l.bf16 %v1610_v34 }
  0x6c   :  { %v694_v50 = vpop.permute.xlu2 %693  ;;  %v881_v25 = vrot.slane %v880_v14, 2 }
  0x6d   :  { %v819_v19 = vmul.f32 %v1547_v7, %v694_v50 }
  0x6e   :  { %v882_v44 = vadd.f32 %v881_v25, %v880_v14 }
  0x6f   :  { %v899_v35 = vsel %vm426_vm0, %v819_v19, 0.0 }
  0x70   :  { %v900_v48 = vrot.slane %v899_v35, 4 }
  0x72   :  { %296 = vperm.xlu2 %1630, %v182_v53  }
  0x73   :  { %291 = vperm.xlu1 %1629, %v181_v56   ;;  %286 = vperm.xlu0 %1628, %v180_v57  }
  0x74   :  { %v709_v62 = vpop.permute.xlu2 %708 }
  0x75   :  { %v664_v0 = vpop.permute.xlu1 %663  ;;  %v654_v1 = vpop.permute.xlu0 %653  ;;  %v822_v53 = vmul.f32 %v1552_v30, %v709_v62 }
  0x76   :  { %v813_v3 = vmul.f32 %v1535_v58, %v664_v0  ;;  %v811_v4 = vmul.f32 %v1531_v59, %v654_v1  ;;  %v883_v0 = vrot.slane %v882_v44, 1 }
  0x77   :  { %v920_v7 = vsel %vm426_vm0, %v822_v53, 0.0 }
  0x78   :  { %v857_v8 = vsel %vm426_vm0, %v813_v3, 0.0  ;;  %v843_v9 = vsel %vm426_vm0, %v811_v4, 0.0  ;;  %v1935_v3 = vadd.f32 %v900_v48, %v899_v35  ;;  %v921_v25 = vrot.slane %v920_v7, 4 }
  0x79   :  { %v858_v12 = vrot.slane %v857_v8, 4  ;;  %v844_v13 = vrot.slane %v843_v9, 4 }
  0x7a   :  { %311 = vperm.xlu2 %1630, %v185_v6   ;;  %v191_v6 = vld [vmem:[%s2437_s1 + $0xa8] sm:$0xff] }
  0x7b   :  { %v845_v18 = vadd.f32 %v844_v13, %v843_v9  ;;  %306 = vperm.xlu1 %1629, %v184_v10   ;;  %301 = vperm.xlu0 %1628, %v183_v11   ;;  %v859_v21 = vadd.f32 %v858_v12, %v857_v8  ;;  %v190_v10 = vld [vmem:[%s2437_s1 + $0xa0] sm:$0xff] }
  0x7c   :  { %v1899_v22 = vpop.permute.xlu2 %723 }
  0x7d   :  { %v669_v23 = vpop.permute.xlu1 %668  ;;  %v659_v24 = vpop.permute.xlu0 %658  ;;  %v846_v31 = vrot.slane %v845_v18, 2  ;;  %v860_v36 = vrot.slane %v859_v21, 2 }
  0x7e   :  { %v814_v27 = vmul.f32 %v1536_v15, %v669_v23  ;;  %v812_v28 = vmul.f32 %v1532_v16, %v659_v24  ;;  %v189_v15 = vld [vmem:[%s2437_s1 + $0x98] sm:$0xff]  ;;  %v825_v16 = vmul.f32 %v1559_v40, %v1899_v22  ;;  %v884_v23 = vadd.f32 %v883_v0, %v882_v44 }
  0x7f   :  { %v847_v49 = vadd.f32 %v846_v31, %v845_v18  ;;  %v861_v54 = vadd.f32 %v860_v36, %v859_v21  ;;  %v1613_v21 = vld [vmem:[%s2438_s2 + $0x30] sm:$0xff]   ;;  %v902_v24 = vrot.slane %v1935_v3, 2 }
  0x80   :  { %v864_v37 = vsel %vm426_vm0, %v814_v27, 0.0  ;;  %v850_v38 = vsel %vm426_vm0, %v812_v28, 0.0  ;;  %v1555_v48 = vunpack.c.l.bf16 %v1613_v21 }
  0x81   :  { %v865_v41 = vrot.slane %v864_v37, 4  ;;  %v851_v42 = vrot.slane %v850_v38, 4  ;;  %v848_v62 = vrot.slane %v847_v49, 1  ;;  %v862_v8 = vrot.slane %v861_v54, 1 }
  0x82   :  { %326 = vperm.xlu2 %1630, %v188_v32   ;;  %v903_v0 = vadd.f32 %v902_v24, %v1935_v3 }
  0x83   :  { %v866_v50 = vadd.f32 %v865_v41, %v864_v37  ;;  %v852_v51 = vadd.f32 %v851_v42, %v850_v38  ;;  %321 = vperm.xlu1 %1629, %v187_v39   ;;  %316 = vperm.xlu0 %1628, %v186_v43   ;;  %v849_v17 = vadd.f32 %v848_v62, %v847_v49  ;;  %v1556_v37 = vunpack.c.h.bf16 %v1613_v21  ;;  %v194_v21 = vld [vmem:[%s2437_s1 + $0xc0] sm:$0xff] }
  0x84   :  { %v1931_v55 = vpop.permute.xlu2 %738  ;;  %v863_v27 = vadd.f32 %v862_v8, %v861_v54  ;;  %v941_v39 = vsel %vm426_vm0, %v825_v16, 0.0  ;;  %v922_v43 = vadd.f32 %v921_v25, %v920_v7  ;;  %v192_v54 = vld [vmem:[%s2437_s1 + $0xb0] sm:$0xff]  ;;  %v1563_v25 = vunpack.c.l.bf16 %v1913_v33 }
  0x85   :  { %v867_v56 = vrot.slane %v866_v50, 2  ;;  %v853_v57 = vrot.slane %v852_v51, 2  ;;  %v689_v58 = vpop.permute.xlu1 %688  ;;  %v684_v59 = vpop.permute.xlu0 %683  ;;  %v828_v3 = vmul.f32 %v1564_v45, %v1931_v55  ;;  %v195_v45 = vld [vmem:[%s2437_s1 + $0xc8] sm:$0xff]  ;;  %v904_v55 = vrot.slane %v903_v0, 1 }
  0x86   :  { %v818_v1 = vmul.f32 %v1544_v46, %v689_v58  ;;  %v817_v2 = vmul.f32 %v1543_v47, %v684_v59  ;;  %v193_v47 = vld [vmem:[%s2437_s1 + $0xb8] sm:$0xff]  ;;  %v923_v62 = vrot.slane %v922_v43, 2 }
  0x87   :  { %v868_v4 = vadd.f32 %v867_v56, %v866_v50  ;;  %v854_v5 = vadd.f32 %v853_v57, %v852_v51  ;;  %v942_v56 = vrot.slane %v941_v39, 4  ;;  %v962_v24 = vsel %vm426_vm0, %v828_v3, 0.0 }
  0x88   :  { %v892_v9 = vsel %vm426_vm0, %v818_v1, 0.0  ;;  %v885_v63 = vsel %vm426_vm0, %v817_v2, 0.0 }
  0x89   :  { %v869_v11 = vrot.slane %v868_v4, 1  ;;  %v855_v12 = vrot.slane %v854_v5, 1  ;;  %v893_v13 = vrot.slane %v892_v9, 4  ;;  %v886_v14 = vrot.slane %v885_v63, 4 }
  0x8a   :  { %341 = vperm.xlu2 %1630, %v191_v6  }
  0x8b   :  { %v856_v18 = vadd.f32 %v855_v12, %v854_v5  ;;  %v894_v19 = vadd.f32 %v893_v13, %v892_v9  ;;  %v887_v20 = vadd.f32 %v886_v14, %v885_v63  ;;  %336 = vperm.xlu1 %1629, %v190_v10   ;;  %331 = vperm.xlu0 %1628, %v189_v15  }
  0x8c   :  { %v1954_v22 = vpop.permute.xlu2 %753  ;;  %v870_v28 = vadd.f32 %v869_v11, %v868_v4  ;;  %v1975_v4 = vld [vmem:[%s2438_s2 + $0x50] sm:$0xff]   ;;  %v943_v11 = vadd.f32 %v942_v56, %v941_v39 }
  0x8d   :  { %v1170_v29 = vsel %vm1099_vm1, %v856_v18, %v849_v17  ;;  %v895_v30 = vrot.slane %v894_v19, 2  ;;  %v888_v31 = vrot.slane %v887_v20, 2  ;;  %v704_v32 = vpop.permute.xlu1 %703  ;;  %v699_v34 = vpop.permute.xlu0 %698  ;;  %v1571_v14 = vunpack.c.l.bf16 %v1975_v4  ;;  %v1992_v18 = vld [vmem:[%s2438_s2 + $0x58] sm:$0xff]  }
  0x8e   :  { %v821_v35 = vmul.f32 %v1551_v60, %v704_v32  ;;  %v820_v36 = vmul.f32 %v1548_v61, %v699_v34  ;;  %v1171_v38 = vsel %vm1101_vm2, %v863_v27, %v1170_v29  ;;  %v1560_v27 = vunpack.c.h.bf16 %v1904_v26 }
  0x8f   :  { %v896_v40 = vadd.f32 %v895_v30, %v894_v19  ;;  %v889_v41 = vadd.f32 %v888_v31, %v887_v20  ;;  %v1172_v42 = vsel %vm1103_vm3, %v870_v28, %v1171_v38  ;;  %v944_v28 = vrot.slane %v943_v11, 2 }
  0x90   :  { %v913_v44 = vsel %vm426_vm0, %v821_v35, 0.0  ;;  %v906_v46 = vsel %vm426_vm0, %v820_v36, 0.0  ;;  %v1173_v57 = vsel %vm1105_vm4, %v1929_v52, %v1172_v42  ;;  %v1576_v34 = vunpack.c.h.bf16 %v1992_v18  ;;  %v196_v36 = vld [vmem:[%s2437_s1 + $0xd0] sm:$0xff] }
  0x91   :  { %v897_v49 = vrot.slane %v896_v40, 1  ;;  %v890_v50 = vrot.slane %v889_v41, 1  ;;  %v914_v51 = vrot.slane %v913_v44, 4  ;;  %v907_v53 = vrot.slane %v906_v46, 4 }
  0x92   :  { %v1174_v2 = vsel %vm1107_vm5, %v884_v23, %v1173_v57  ;;  %v924_v23 = vadd.f32 %v923_v62, %v922_v43  ;;  %v963_v38 = vrot.slane %v962_v24, 4  ;;  %v831_v42 = vmul.f32 %v1571_v14, %v1954_v22  ;;  %v198_v22 = vld [vmem:[%s2437_s1 + $0xe0] sm:$0xff] }
  0x93   :  { %v891_v58 = vadd.f32 %v890_v50, %v889_v41  ;;  %v915_v59 = vadd.f32 %v914_v51, %v913_v44  ;;  %v908_v60 = vadd.f32 %v907_v53, %v906_v46  ;;  %351 = vperm.xlu1 %1629, %v193_v47   ;;  %v898_v61 = vadd.f32 %v897_v49, %v896_v40  ;;  %v1616_v50 = vld [vmem:[%s2438_s2 + $0x48] sm:$0xff]  }
  0x94   :  { %346 = vperm.xlu0 %1628, %v192_v54   ;;  %v769_v1 = vpop.permute.xlu2 %768  ;;  %v925_v41 = vrot.slane %v924_v23, 1  ;;  %v945_v46 = vadd.f32 %v944_v28, %v943_v11  ;;  %v964_v57 = vadd.f32 %v963_v38, %v962_v24  ;;  %v1567_v62 = vunpack.c.l.bf16 %v1616_v50  ;;  %v199_v11 = vld [vmem:[%s2437_s1 + $0xe8] sm:$0xff]  ;;  %v200_v38 = vld [vmem:[%s2437_s1 + $0xf0] sm:$0xff] }
  0x95   :  { %v916_v5 = vrot.slane %v915_v59, 2  ;;  %v909_v6 = vrot.slane %v908_v60, 2  ;;  %v719_v52 = vpop.permute.xlu1 %718  ;;  %v714_v7 = vpop.permute.xlu0 %713  ;;  %v1175_v8 = vsel %vm1109_vm6, %v891_v58, %v1174_v2  ;;  %v834_v53 = vmul.f32 %v1576_v34, %v769_v1 }
  0x96   :  { %v824_v9 = vmul.f32 %v1556_v37, %v719_v52  ;;  %v823_v63 = vmul.f32 %v1555_v48, %v714_v7  ;;  %v1176_v10 = vsel %vm1111_vm7, %v898_v61, %v1175_v8  ;;  %v905_v37 = vadd.f32 %v904_v55, %v903_v0  ;;  %v197_v61 = vld [vmem:[%s2437_s1 + $0xd8] sm:$0xff] }
  0x97   :  { %v917_v12 = vadd.f32 %v916_v5, %v915_v59  ;;  %v910_v13 = vadd.f32 %v909_v6, %v908_v60  ;;  %1198 = vrot.lane.b32.xlu2 %v1176_v10, %s1662_s23  ;;  %v983_v0 = vsel %vm426_vm0, %v831_v42, 0.0  ;;  %v1568_v1 = vunpack.c.h.bf16 %v1616_v50 }
  0x98   :  { %v934_v15 = vsel %vm426_vm0, %v824_v9, 0.0  ;;  %v927_v16 = vsel %vm426_vm0, %v823_v63, 0.0  ;;  %v926_v8 = vadd.f32 %v925_v41, %v924_v23  ;;  %v946_v3 = vrot.slane %v945_v46, 1  ;;  %v2025_v63 = vld [vmem:[%s2438_s2 + $0x68] sm:$0xff]  }
  0x99   :  { %v911_v17 = vrot.slane %v910_v13, 1  ;;  %v935_v19 = vrot.slane %v934_v15, 4  ;;  %v928_v20 = vrot.slane %v927_v16, 4  ;;  %v918_v29 = vrot.slane %v917_v12, 1 }
  0x9a   :  { %v1004_v9 = vsel %vm426_vm0, %v834_v53, 0.0  ;;  %v1583_v23 = vunpack.c.l.bf16 %v2025_v63 }
  0x9b   :  { %v936_v30 = vadd.f32 %v935_v19, %v934_v15  ;;  %v929_v31 = vadd.f32 %v928_v20, %v927_v16  ;;  %361 = vperm.xlu1 %1629, %v195_v45   ;;  %v912_v32 = vadd.f32 %v911_v17, %v910_v13  ;;  %v919_v47 = vadd.f32 %v918_v29, %v917_v12 }
  0x9c   :  { %356 = vperm.xlu0 %1628, %v194_v21   ;;  %v2001_v35 = vpop.permute.xlu2 %783  ;;  %v965_v12 = vrot.slane %v964_v57, 2  ;;  %v984_v13 = vrot.slane %v983_v0, 4  ;;  %v1005_v21 = vrot.slane %v1004_v9, 4 }
  0x9d   :  { %v937_v33 = vrot.slane %v936_v30, 2  ;;  %v930_v39 = vrot.slane %v929_v31, 2  ;;  %v734_v26 = vpop.permute.xlu1 %733  ;;  %v729_v40 = vpop.permute.xlu0 %728  ;;  %v1177_v51 = vsel %vm1099_vm1, %v912_v32, %v905_v37 }
  0x9e   :  { %v827_v43 = vmul.f32 %v1563_v25, %v734_v26  ;;  %v826_v44 = vmul.f32 %v1560_v27, %v729_v40  ;;  %v1178_v7 = vsel %vm1101_vm2, %v919_v47, %v1177_v51  ;;  %v947_v27 = vadd.f32 %v946_v3, %v945_v46 }
  0x9f   :  { %v938_v48 = vadd.f32 %v937_v33, %v936_v30  ;;  %v931_v49 = vadd.f32 %v930_v39, %v929_v31  ;;  %366 = vperm.xlu2 %1630, %v196_v36   ;;  %v1179_v20 = vsel %vm1103_vm3, %v926_v8, %v1178_v7  ;;  %v201_v31 = vld [vmem:[%s2437_s1 + $0xf8] sm:$0xff]  ;;  %v966_v32 = vadd.f32 %v965_v12, %v964_v57 }
  0xa0   :  { %v955_v54 = vsel %vm426_vm0, %v827_v43, 0.0  ;;  %v948_v56 = vsel %vm426_vm0, %v826_v44, 0.0  ;;  %v985_v33 = vadd.f32 %v984_v13, %v983_v0  ;;  %v1575_v39 = vunpack.c.l.bf16 %v1992_v18  ;;  %v1619_v0 = vld [vmem:[%s2438_s2 + $0x60] sm:$0xff]  }
  0xa1   :  { %v932_v58 = vrot.slane %v931_v49, 1  ;;  %v956_v59 = vrot.slane %v955_v54, 4  ;;  %v949_v60 = vrot.slane %v948_v56, 4  ;;  %v939_v2 = vrot.slane %v938_v48, 1 }
  0xa2   :  { %v1572_v26 = vunpack.c.h.bf16 %v1975_v4  ;;  %v1006_v41 = vadd.f32 %v1005_v21, %v1004_v9  ;;  %v837_v46 = vmul.f32 %v1583_v23, %v2001_v35  ;;  %v967_v18 = vrot.slane %v966_v32, 1 }
  0xa3   :  { %v933_v5 = vadd.f32 %v932_v58, %v931_v49  ;;  %v957_v6 = vadd.f32 %v956_v59, %v955_v54  ;;  %v950_v52 = vadd.f32 %v949_v60, %v948_v56  ;;  %376 = vperm.xlu1 %1629, %v198_v22   ;;  %v940_v55 = vadd.f32 %v939_v2, %v938_v48  ;;  %v2050_v48 = vld [vmem:[%s2438_s2 + $0x70] sm:$0xff]  }
  0xa4   :  { %371 = vperm.xlu0 %1628, %v197_v61   ;;  %v2027_v10 = vpop.permute.xlu2 %798  ;;  %v986_v56 = vrot.slane %v985_v33, 2  ;;  %v1007_v58 = vrot.slane %v1006_v41, 2  ;;  %v1588_v59 = vunpack.c.h.bf16 %v2050_v48  ;;  %v1025_v2 = vsel %vm426_vm0, %v837_v46, 0.0 }
  0xa5   :  { %v958_v14 = vrot.slane %v957_v6, 2  ;;  %v951_v15 = vrot.slane %v950_v52, 2  ;;  %v749_v16 = vpop.permute.xlu1 %748  ;;  %v744_v45 = vpop.permute.xlu0 %743  ;;  %v1180_v25 = vsel %vm1105_vm4, %v933_v5, %v1179_v20  ;;  %v968_v3 = vadd.f32 %v967_v18, %v966_v32 }
  0xa6   :  { %v830_v17 = vmul.f32 %v1568_v1, %v749_v16  ;;  %v829_v19 = vmul.f32 %v1567_v62, %v744_v45  ;;  %v1181_v40 = vsel %vm1107_vm5, %v940_v55, %v1180_v25  ;;  %v987_v9 = vadd.f32 %v986_v56, %v985_v33 }
  0xa7   :  { %v952_v24 = vadd.f32 %v951_v15, %v950_v52  ;;  %381 = vperm.xlu2 %1630, %v199_v11   ;;  %v959_v28 = vadd.f32 %v958_v14, %v957_v6  ;;  %v1182_v54 = vsel %vm1109_vm6, %v947_v27, %v1181_v40  ;;  %v1580_v11 = vunpack.c.h.bf16 %v1619_v0 }
  0xa8   :  { %v976_v29 = vsel %vm426_vm0, %v830_v17, 0.0  ;;  %v969_v30 = vsel %vm426_vm0, %v829_v19, 0.0  ;;  %v1579_v12 = vunpack.c.l.bf16 %v1619_v0  ;;  %v1008_v13 = vadd.f32 %v1007_v58, %v1006_v41 }
  0xa9   :  { %v953_v34 = vrot.slane %v952_v24, 1  ;;  %v977_v36 = vrot.slane %v976_v29, 4  ;;  %v970_v37 = vrot.slane %v969_v30, 4  ;;  %v960_v47 = vrot.slane %v959_v28, 1 }
  0xaa   :  { %v1026_v45 = vrot.slane %v1025_v2, 4  ;;  %v988_v27 = vrot.slane %v987_v9, 1 }
  0xab   :  { %v978_v42 = vadd.f32 %v977_v36, %v976_v29  ;;  %v971_v43 = vadd.f32 %v970_v37, %v969_v30  ;;  %391 = vperm.xlu1 %1629, %v201_v31   ;;  %v954_v44 = vadd.f32 %v953_v34, %v952_v24  ;;  %v961_v1 = vadd.f32 %v960_v47, %v959_v28 }
  0xac   :  { %386 = vperm.xlu0 %1628, %v200_v38   ;;  %v2052_v49 = vpop.permute.xlu2 %236  ;;  %v840_v28 = vmul.f32 %v1588_v59, %v2027_v10  ;;  %v1009_v31 = vrot.slane %v1008_v13, 1  ;;  %v1027_v36 = vadd.f32 %v1026_v45, %v1025_v2  ;;  %v1587_v10 = vunpack.c.l.bf16 %v2050_v48 }
  0xad   :  { %v979_v4 = vrot.slane %v978_v42, 2  ;;  %v972_v50 = vrot.slane %v971_v43, 2  ;;  %v764_v51 = vpop.permute.xlu1 %763  ;;  %v759_v53 = vpop.permute.xlu0 %758  ;;  %v1183_v35 = vsel %vm1111_vm7, %v954_v44, %v1182_v54  ;;  %v1184_v55 = vsel %vm1099_vm1, %v968_v3, %v961_v1  ;;  %v1593_v3 = vld [vmem:[%s2436_s0 + $0x8] sm:$0xff]  }
  0xae   :  { %v833_v22 = vmul.f32 %v1575_v39, %v764_v51  ;;  %v832_v57 = vmul.f32 %v1572_v26, %v759_v53  ;;  %v1584_v44 = vunpack.c.h.bf16 %v2025_v63  ;;  %v2078_v51 = vld [vmem:[%s2436_s0] sm:$0xff]  }
  0xaf   :  { %v980_v60 = vadd.f32 %v979_v4, %v978_v42  ;;  %v973_v61 = vadd.f32 %v972_v50, %v971_v43  ;;  %1200 = vrot.lane.b32.xlu2 %v1183_v35, %s1662_s23  ;;  %v989_v42 = vadd.f32 %v988_v27, %v987_v9  ;;  %v1046_v43 = vsel %vm426_vm0, %v840_v28, 0.0 }
  0xb0   :  { %v997_v62 = vsel %vm426_vm0, %v833_v22, 0.0  ;;  %v990_v5 = vsel %vm426_vm0, %v832_v57, 0.0  ;;  %v1028_v50 = vrot.slane %v1027_v36, 2  ;;  %v1010_v35 = vadd.f32 %v1009_v31, %v1008_v13 }
  0xb1   :  { %v981_v6 = vrot.slane %v980_v60, 1  ;;  %v974_v52 = vrot.slane %v973_v61, 1  ;;  %v998_v7 = vrot.slane %v997_v62, 4  ;;  %v991_v8 = vrot.slane %v990_v5, 4 }
  0xb2   :  { %v1047_v58 = vrot.slane %v1046_v43, 4  ;;  %v1467_v0 = vunpack.c.l.bf16 %v2078_v51 }
  0xb3   :  { %v975_v14 = vadd.f32 %v974_v52, %v973_v61  ;;  %v999_v15 = vadd.f32 %v998_v7, %v997_v62  ;;  %v992_v16 = vadd.f32 %v991_v8, %v990_v5  ;;  %v982_v17 = vadd.f32 %v981_v6, %v980_v60  ;;  %v1622_v5 = vld [vmem:[%s2438_s2 + $0x78] sm:$0xff]  }
  0xb4   :  { %v2065_v19 = vpop.permute.xlu2 %251  ;;  %v1048_v13 = vadd.f32 %v1047_v58, %v1046_v43 }
  0xb5   :  { %v1185_v20 = vsel %vm1101_vm2, %v975_v14, %v1184_v55  ;;  %v1000_v21 = vrot.slane %v999_v15, 2  ;;  %v993_v23 = vrot.slane %v992_v16, 2  ;;  %v779_v24 = vpop.permute.xlu1 %778  ;;  %v774_v25 = vpop.permute.xlu0 %773  ;;  %v1592_v14 = vunpack.c.h.bf16 %v1622_v5 }
  0xb6   :  { %v836_v29 = vmul.f32 %v1580_v11, %v779_v24  ;;  %v835_v30 = vmul.f32 %v1579_v12, %v774_v25  ;;  %v1186_v33 = vsel %vm1103_vm3, %v982_v17, %v1185_v20  ;;  %v1029_v12 = vadd.f32 %v1028_v50, %v1027_v36 }
  0xb7   :  { %v1001_v32 = vadd.f32 %v1000_v21, %v999_v15  ;;  %v994_v34 = vadd.f32 %v993_v23, %v992_v16  ;;  %v1187_v54 = vsel %vm1105_vm4, %v989_v42, %v1186_v33  ;;  %v1591_v15 = vunpack.c.l.bf16 %v1622_v5 }
  0xb8   :  { %v1018_v37 = vsel %vm426_vm0, %v836_v29, 0.0  ;;  %v1011_v38 = vsel %vm426_vm0, %v835_v30, 0.0  ;;  %v394_v16 = vmul.f32 %v1467_v0, %v2052_v49  ;;  %v1472_v21 = vunpack.c.h.bf16 %v1593_v3 }
  0xb9   :  { %v1002_v39 = vrot.slane %v1001_v32, 1  ;;  %v995_v26 = vrot.slane %v994_v34, 1  ;;  %v1019_v40 = vrot.slane %v1018_v37, 4  ;;  %v1012_v41 = vrot.slane %v1011_v38, 4 }
  0xba   :  { %v1030_v29 = vrot.slane %v1029_v12, 1  ;;  %v1049_v30 = vrot.slane %v1048_v13, 2 }
  0xbb   :  { %v1003_v46 = vadd.f32 %v1002_v39, %v1001_v32  ;;  %v996_v47 = vadd.f32 %v995_v26, %v994_v34  ;;  %v1020_v18 = vadd.f32 %v1019_v40, %v1018_v37  ;;  %v1013_v4 = vadd.f32 %v1012_v41, %v1011_v38  ;;  %v2107_v41 = vld [vmem:[%s2436_s0 + $0x18] sm:$0xff]  }
  0xbc   :  { %v2080_v53 = vpop.permute.xlu2 %266  ;;  %v427_v34 = vsel %vm426_vm0, %v394_v16, 0.0  ;;  %v397_v38 = vmul.f32 %v1472_v21, %v2065_v19 }
  0xbd   :  { %v1021_v56 = vrot.slane %v1020_v18, 2  ;;  %v1014_v22 = vrot.slane %v1013_v4, 2  ;;  %v794_v57 = vpop.permute.xlu1 %793  ;;  %v789_v48 = vpop.permute.xlu0 %788  ;;  %v1188_v63 = vsel %vm1107_vm5, %v996_v47, %v1187_v54  ;;  %v1468_v47 = vunpack.c.h.bf16 %v2078_v51 }
  0xbe   :  { %v839_v59 = vmul.f32 %v1587_v10, %v794_v57  ;;  %v838_v60 = vmul.f32 %v1584_v44, %v789_v48  ;;  %v1189_v61 = vsel %vm1109_vm6, %v1003_v46, %v1188_v63  ;;  %v1031_v10 = vadd.f32 %v1030_v29, %v1029_v12 }
  0xbf   :  { %v1022_v2 = vadd.f32 %v1021_v56, %v1020_v18  ;;  %v1015_v1 = vadd.f32 %v1014_v22, %v1013_v4  ;;  %v1190_v62 = vsel %vm1111_vm7, %v1010_v35, %v1189_v61  ;;  %v1050_v44 = vadd.f32 %v1049_v30, %v1048_v13 }
  0xc0   :  { %v1039_v6 = vsel %vm426_vm0, %v839_v59, 0.0  ;;  %v1032_v52 = vsel %vm426_vm0, %v838_v60, 0.0  ;;  %1202 = vrot.lane.b32.xlu0 %v1190_v62, %s1662_s23  ;;  %v1471_v46 = vunpack.c.l.bf16 %v1593_v3  ;;  %v428_v18 = vrot.slane %v427_v34, 4 }
  0xc1   :  { %v1023_v7 = vrot.slane %v1022_v2, 1  ;;  %v1016_v8 = vrot.slane %v1015_v1, 1  ;;  %v1040_v9 = vrot.slane %v1039_v6, 4  ;;  %v1033_v11 = vrot.slane %v1032_v52, 4 }
  0xc2   :  { %v448_v54 = vsel %vm426_vm0, %v397_v38, 0.0  ;;  %v1479_v22 = vunpack.c.l.bf16 %v2107_v41  ;;  %v1051_v51 = vrot.slane %v1050_v44, 1  ;;  %v1596_v38 = vld [vmem:[%s2436_s0 + $0x20] sm:$0xff]  }
  0xc3   :  { %v1041_v45 = vadd.f32 %v1040_v9, %v1039_v6  ;;  %v1034_v55 = vadd.f32 %v1033_v11, %v1032_v52  ;;  %v1024_v17 = vadd.f32 %v1023_v7, %v1022_v2  ;;  %v1017_v20 = vadd.f32 %v1016_v8, %v1015_v1  ;;  %v1217_v2 = vld [vmem:[%s2440_s4 + $0x18] sm:$0xff]  ;;  %v1594_v52 = vld [vmem:[%s2436_s0 + $0x10] sm:$0xff]  }
  0xc4   :  { %v2097_v23 = vpop.permute.xlu2 %281  ;;  %v429_v1 = vadd.f32 %v428_v18, %v427_v34  ;;  %v449_v62 = vrot.slane %v448_v54, 4  ;;  %1247 = vmatpush.msra.mxu0 %v1217_v2  ;;  %v400_v7 = vmul.f32 %v1479_v22, %v2080_v53  ;;  %v1216_v11 = vld [vmem:[%s2440_s4 + $0x10] sm:$0xff]  ;;  %v1052_v16 = vadd.f32 %v1051_v51, %v1050_v44  ;;  %v1215_v53 = vld [vmem:[%s2440_s4 + $0x8] sm:$0xff] }
  0xc5   :  { %v1042_v24 = vrot.slane %v1041_v45, 2  ;;  %v1035_v25 = vrot.slane %v1034_v55, 2  ;;  %v809_v27 = vpop.permute.xlu1 %808  ;;  %v804_v28 = vpop.permute.xlu0 %803  ;;  %v1191_v49 = vsel %vm1099_vm1, %v1024_v17, %v1017_v20 }
  0xc6   :  { %v842_v31 = vmul.f32 %v1592_v14, %v809_v27  ;;  %v841_v32 = vmul.f32 %v1591_v15, %v804_v28  ;;  %v1192_v48 = vsel %vm1101_vm2, %v1031_v10, %v1191_v49  ;;  %1248 = vmatpush.msra.mxu0 %v1216_v11  ;;  %v450_v27 = vadd.f32 %v449_v62, %v448_v54 }
  0xc7   :  { %v1043_v36 = vadd.f32 %v1042_v24, %v1041_v45  ;;  %v1036_v37 = vadd.f32 %v1035_v25, %v1034_v55  ;;  %v1476_v45 = vunpack.c.h.bf16 %v1594_v52  ;;  %v1475_v55 = vunpack.c.l.bf16 %v1594_v52 }
  0xc8   :  { %v1060_v33 = vsel %vm426_vm0, %v842_v31, 0.0  ;;  %v1053_v39 = vsel %vm426_vm0, %v841_v32, 0.0  ;;  %1249 = vmatpush.msra.mxu0 %v1215_v53  ;;  %v430_v25 = vrot.slane %v429_v1, 2  ;;  %v469_v28 = vsel %vm426_vm0, %v400_v7, 0.0  ;;  %v1214_v31 = vld [vmem:[%s2440_s4] sm:$0xff]  ;;  %v1599_v53 = vld [vmem:[%s2436_s0 + $0x38] sm:$0xff]  }
  0xc9   :  { %v1044_v26 = vrot.slane %v1043_v36, 1  ;;  %v1037_v40 = vrot.slane %v1036_v37, 1  ;;  %v1061_v42 = vrot.slane %v1060_v33, 4  ;;  %v1054_v43 = vrot.slane %v1053_v39, 4 }
  0xca   :  { %1250 = vmatpush.msra.mxu0 %v1214_v31  ;;  %v451_v10 = vrot.slane %v450_v27, 2  ;;  %v1483_v54 = vunpack.c.l.bf16 %v1596_v38 }
  0xcb   :  { %v1038_v19 = vadd.f32 %v1037_v40, %v1036_v37  ;;  %v1062_v4 = vadd.f32 %v1061_v42, %v1060_v33  ;;  %v1055_v50 = vadd.f32 %v1054_v43, %v1053_v39  ;;  %v1045_v56 = vadd.f32 %v1044_v26, %v1043_v36 }
  0xcc   :  { %v2112_v57 = vpop.permute.xlu2 %296  ;;  %v470_v40 = vrot.slane %v469_v28, 4  ;;  %v431_v43 = vadd.f32 %v430_v25, %v429_v1 }
  0xcd   :  { %v1063_v35 = vrot.slane %v1062_v4, 2  ;;  %v1056_v63 = vrot.slane %v1055_v50, 2  ;;  %v247_v58 = vpop.permute.xlu1 %246  ;;  %v242_v59 = vpop.permute.xlu0 %241  ;;  %v1193_v60 = vsel %vm1103_vm3, %v1038_v19, %v1192_v48 }
  0xce   :  { %v396_v61 = vmul.f32 %v1471_v46, %v247_v58  ;;  %v395_v0 = vmul.f32 %v1468_v47, %v242_v59  ;;  %v1194_v9 = vsel %vm1105_vm4, %v1045_v56, %v1193_v60  ;;  %v1484_v47 = vunpack.c.h.bf16 %v1596_v38  ;;  %v2151_v59 = vld [vmem:[%s2436_s0 + $0x30] sm:$0xff]  }
  0xcf   :  { %v1064_v5 = vadd.f32 %v1063_v35, %v1062_v4  ;;  %v1057_v6 = vadd.f32 %v1056_v63, %v1055_v50  ;;  %v1195_v30 = vsel %vm1107_vm5, %v1052_v16, %v1194_v9  ;;  %v1480_v56 = vunpack.c.h.bf16 %v2107_v41 }
  0xd0   :  { %v441_v8 = vsel %vm426_vm0, %v396_v61, 0.0  ;;  %v434_v3 = vsel %vm426_vm0, %v395_v0, 0.0  ;;  %v471_v22 = vadd.f32 %v470_v40, %v469_v28  ;;  %v432_v63 = vrot.slane %v431_v43, 1 }
  0xd1   :  { %v1065_v12 = vrot.slane %v1064_v5, 1  ;;  %v1058_v13 = vrot.slane %v1057_v6, 1  ;;  %v442_v14 = vrot.slane %v441_v8, 4  ;;  %v435_v15 = vrot.slane %v434_v3, 4 }
  0xd2   :  { %v452_v58 = vadd.f32 %v451_v10, %v450_v27  ;;  %v403_v60 = vmul.f32 %v1484_v47, %v2097_v23  ;;  %v1491_v52 = vunpack.c.l.bf16 %v2151_v59  ;;  %v433_v9 = vadd.f32 %v432_v63, %v431_v43 }
  0xd3   :  { %v1059_v17 = vadd.f32 %v1058_v13, %v1057_v6  ;;  %v443_v20 = vadd.f32 %v442_v14, %v441_v8  ;;  %v436_v21 = vadd.f32 %v435_v15, %v434_v3  ;;  %v1066_v24 = vadd.f32 %v1065_v12, %v1064_v5  ;;  %v1597_v3 = vld [vmem:[%s2436_s0 + $0x28] sm:$0xff]  }
  0xd4   :  { %v2133_v29 = vpop.permute.xlu2 %311  ;;  %v472_v6 = vrot.slane %v471_v22, 2  ;;  %v453_v23 = vrot.slane %v452_v58, 1  ;;  %v490_v13 = vsel %vm426_vm0, %v403_v60, 0.0 }
  0xd5   :  { %v444_v32 = vrot.slane %v443_v20, 2  ;;  %v437_v34 = vrot.slane %v436_v21, 2  ;;  %v262_v36 = vpop.permute.xlu1 %261  ;;  %v257_v37 = vpop.permute.xlu0 %256  ;;  %v1196_v49 = vsel %vm1109_vm6, %v1059_v17, %v1195_v30  ;;  %v1488_v17 = vunpack.c.h.bf16 %v1597_v3 }
  0xd6   :  { %v399_v33 = vmul.f32 %v1476_v45, %v262_v36  ;;  %v398_v39 = vmul.f32 %v1475_v55, %v257_v37  ;;  %v1197_v26 = vsel %vm1111_vm7, %v1066_v24, %v1196_v49  ;;  %v406_v24 = vmul.f32 %v1491_v52, %v2112_v57 }
  0xd7   :  { %v438_v42 = vadd.f32 %v437_v34, %v436_v21  ;;  %1204 = vrot.lane.b32.xlu1 %v1197_v26, %s1662_s23  ;;  %v445_v18 = vadd.f32 %v444_v32, %v443_v20  ;;  %v1487_v20 = vunpack.c.l.bf16 %v1597_v3  ;;  %v473_v21 = vadd.f32 %v472_v6, %v471_v22 }
  0xd8   :  { %v462_v44 = vsel %vm426_vm0, %v399_v33, 0.0  ;;  %v455_v46 = vsel %vm426_vm0, %v398_v39, 0.0  ;;  %v491_v28 = vrot.slane %v490_v13, 4  ;;  %v1496_v32 = vunpack.c.h.bf16 %v1599_v53 }
  0xd9   :  { %v463_v19 = vrot.slane %v462_v44, 4  ;;  %v456_v4 = vrot.slane %v455_v46, 4  ;;  %v439_v50 = vrot.slane %v438_v42, 1  ;;  %v446_v51 = vrot.slane %v445_v18, 1 }
  0xda   :  { %v454_v49 = vadd.f32 %v453_v23, %v452_v58  ;;  %v474_v26 = vrot.slane %v473_v21, 1  ;;  %v511_v40 = vsel %vm426_vm0, %v406_v24, 0.0  ;;  %v492_v57 = vadd.f32 %v491_v28, %v490_v13 }
  0xdb   :  { %v464_v48 = vadd.f32 %v463_v19, %v462_v44  ;;  %v457_v35 = vadd.f32 %v456_v4, %v455_v46  ;;  %v440_v62 = vadd.f32 %v439_v50, %v438_v42  ;;  %v447_v14 = vadd.f32 %v446_v51, %v445_v18 }
  0xdc   :  { %v2155_v8 = vpop.permute.xlu2 %326  ;;  %v1492_v22 = vunpack.c.h.bf16 %v2151_v59  ;;  %v493_v51 = vrot.slane %v492_v57, 2 }
  0xdd   :  { %v465_v61 = vrot.slane %v464_v48, 2  ;;  %v458_v0 = vrot.slane %v457_v35, 2  ;;  %v277_v2 = vpop.permute.xlu1 %276  ;;  %v272_v1 = vpop.permute.xlu0 %271  ;;  %v1100_v45 = vsel %vm1099_vm1, %v440_v62, %v433_v9 }
  0xde   :  { %v402_v5 = vmul.f32 %v1483_v54, %v277_v2  ;;  %v401_v41 = vmul.f32 %v1480_v56, %v272_v1  ;;  %v1102_v30 = vsel %vm1101_vm2, %v447_v14, %v1100_v45  ;;  %v512_v54 = vrot.slane %v511_v40, 4 }
  0xdf   :  { %v459_v7 = vadd.f32 %v458_v0, %v457_v35  ;;  %v466_v15 = vadd.f32 %v465_v61, %v464_v48  ;;  %v1104_v46 = vsel %vm1103_vm3, %v454_v49, %v1102_v30  ;;  %v1495_v56 = vunpack.c.l.bf16 %v1599_v53 }
  0xe0   :  { %v483_v11 = vsel %vm426_vm0, %v402_v5, 0.0  ;;  %v476_v12 = vsel %vm426_vm0, %v401_v41, 0.0  ;;  %v409_v35 = vmul.f32 %v1496_v32, %v2133_v29  ;;  %v475_v5 = vadd.f32 %v474_v26, %v473_v21 }
  0xe1   :  { %v477_v16 = vrot.slane %v476_v12, 4  ;;  %v460_v55 = vrot.slane %v459_v7, 1  ;;  %v484_v25 = vrot.slane %v483_v11, 4  ;;  %v467_v31 = vrot.slane %v466_v15, 1 }
  0xe2   :  { %v513_v41 = vadd.f32 %v512_v54, %v511_v40  ;;  %v532_v59 = vsel %vm426_vm0, %v409_v35, 0.0 }
  0xe3   :  { %v478_v27 = vadd.f32 %v477_v16, %v476_v12  ;;  %v461_v38 = vadd.f32 %v460_v55, %v459_v7  ;;  %v485_v42 = vadd.f32 %v484_v25, %v483_v11  ;;  %v468_v47 = vadd.f32 %v467_v31, %v466_v15 }
  0xe4   :  { %v2173_v50 = vpop.permute.xlu2 %341  ;;  %v494_v12 = vadd.f32 %v493_v51, %v492_v57  ;;  %v533_v45 = vrot.slane %v532_v59, 4  ;;  %v514_v24 = vrot.slane %v513_v41, 2 }
  0xe5   :  { %v479_v34 = vrot.slane %v478_v27, 2  ;;  %v292_v36 = vpop.permute.xlu1 %291  ;;  %v287_v37 = vpop.permute.xlu0 %286  ;;  %v1106_v48 = vsel %vm1105_vm4, %v461_v38, %v1104_v46  ;;  %v486_v63 = vrot.slane %v485_v42, 2 }
  0xe6   :  { %v405_v33 = vmul.f32 %v1488_v17, %v292_v36  ;;  %v404_v39 = vmul.f32 %v1487_v20, %v287_v37  ;;  %v1108_v62 = vsel %vm1107_vm5, %v468_v47, %v1106_v48  ;;  %v515_v38 = vadd.f32 %v514_v24, %v513_v41 }
  0xe7   :  { %v480_v43 = vadd.f32 %v479_v34, %v478_v27  ;;  %v487_v7 = vadd.f32 %v486_v63, %v485_v42  ;;  %v1110_v11 = vsel %vm1109_vm6, %v475_v5, %v1108_v62  ;;  %v495_v27 = vrot.slane %v494_v12, 1 }
  0xe8   :  { %v504_v10 = vsel %vm426_vm0, %v405_v33, 0.0  ;;  %v497_v44 = vsel %vm426_vm0, %v404_v39, 0.0  ;;  %v534_v34 = vadd.f32 %v533_v45, %v532_v59  ;;  %v516_v46 = vrot.slane %v515_v38, 1 }
  0xe9   :  { %v481_v18 = vrot.slane %v480_v43, 1  ;;  %v505_v19 = vrot.slane %v504_v10, 4  ;;  %v498_v4 = vrot.slane %v497_v44, 4  ;;  %v488_v53 = vrot.slane %v487_v7, 1 }
  0xea   :  { %v496_v39 = vadd.f32 %v495_v27, %v494_v12  ;;  %v535_v42 = vrot.slane %v534_v34, 2  ;;  %v517_v63 = vadd.f32 %v516_v46, %v515_v38  ;;  %v1603_v12 = vld [vmem:[%s2436_s0 + $0x58] sm:$0xff]  }
  0xeb   :  { %v506_v58 = vadd.f32 %v505_v19, %v504_v10  ;;  %v499_v60 = vadd.f32 %v498_v4, %v497_v44  ;;  %v482_v61 = vadd.f32 %v481_v18, %v480_v43  ;;  %v489_v36 = vadd.f32 %v488_v53, %v487_v7  ;;  %v1600_v44 = vld [vmem:[%s2436_s0 + $0x40] sm:$0xff]  }
  0xec   :  { %v1500_v19 = vunpack.c.h.bf16 %v1600_v44  ;;  %v1499_v4 = vunpack.c.l.bf16 %v1600_v44 }
  0xed   :  { %v500_v0 = vrot.slane %v499_v60, 2  ;;  %v307_v2 = vpop.permute.xlu1 %306  ;;  %v302_v1 = vpop.permute.xlu0 %301  ;;  %v507_v3 = vrot.slane %v506_v58, 2  ;;  %v1112_v16 = vsel %vm1111_vm7, %v482_v61, %v1110_v11  ;;  %v1113_v43 = vsel %vm1099_vm1, %v496_v39, %v489_v36 }
  0xee   :  { %v408_v6 = vmul.f32 %v1495_v56, %v307_v2  ;;  %v407_v52 = vmul.f32 %v1492_v22, %v302_v1  ;;  %v536_v56 = vadd.f32 %v535_v42, %v534_v34 }
  0xef   :  { %v501_v29 = vadd.f32 %v500_v0, %v499_v60  ;;  %v508_v17 = vadd.f32 %v507_v3, %v506_v58  ;;  %v1601_v58 = vld [vmem:[%s2436_s0 + $0x48] sm:$0xff]  }
  0xf0   :  { %v525_v9 = vsel %vm426_vm0, %v408_v6, 0.0  ;;  %v518_v23 = vsel %vm426_vm0, %v407_v52, 0.0  ;;  %v537_v1 = vrot.slane %v536_v56, 1  ;;  %v1504_v62 = vunpack.c.h.bf16 %v1601_v58  ;;  %v1602_v6 = vld [vmem:[%s2436_s0 + $0x50] sm:$0xff]  }
  0xf1   :  { %v526_v13 = vrot.slane %v525_v9, 4  ;;  %v519_v14 = vrot.slane %v518_v23, 4  ;;  %v1199_v15 = vpop.permute.xlu2 %1198  ;;  %v502_v25 = vrot.slane %v501_v29, 1  ;;  %v509_v37 = vrot.slane %v508_v17, 1 }
  0xf2   :  { %v1210_v55 = vsel %vm426_vm0, %v1112_v16, %v1199_v15  ;;  %v1503_v41 = vunpack.c.l.bf16 %v1601_v58  ;;  %v1507_v7 = vunpack.c.l.bf16 %v1602_v6  ;;  %v1605_v58 = vld [vmem:[%s2436_s0 + $0x68] sm:$0xff]  }
  0xf3   :  { %v527_v20 = vadd.f32 %v526_v13, %v525_v9  ;;  %v520_v21 = vadd.f32 %v519_v14, %v518_v23  ;;  %1461 = vmatmul.msk.f32.vlgmr.msra.gmra.mxu0 %vm1222_vm8, %v1210_v55  ;;  %v503_v33 = vadd.f32 %v502_v25, %v501_v29  ;;  %v510_v57 = vadd.f32 %v509_v37, %v508_v17 }
  0xf4   :  { %v538_v9 = vadd.f32 %v537_v1, %v536_v56  ;;  %v412_v11 = vmul.f32 %v1503_v41, %v2155_v8  ;;  %v1508_v13 = vunpack.c.h.bf16 %v1602_v6  ;;  %v1519_v6 = vunpack.c.l.bf16 %v1605_v58 }
  0xf5   :  { %v521_v28 = vrot.slane %v520_v21, 2  ;;  %v322_v30 = vpop.permute.xlu1 %321  ;;  %v528_v31 = vrot.slane %v527_v20, 2  ;;  %v317_v32 = vpop.permute.xlu0 %316  ;;  %v1114_v47 = vsel %vm1101_vm2, %v503_v33, %v1113_v43 }
  0xf6   :  { %v1115_v35 = vsel %vm1103_vm3, %v510_v57, %v1114_v47  ;;  %v411_v61 = vmul.f32 %v1500_v19, %v322_v30  ;;  %v410_v0 = vmul.f32 %v1499_v4, %v317_v32  ;;  %v553_v8 = vsel %vm426_vm0, %v412_v11, 0.0  ;;  %v1606_v11 = vld [vmem:[%s2436_s0 + $0x70] sm:$0xff]  }
  0xf7   :  { %v522_v49 = vadd.f32 %v521_v28, %v520_v21  ;;  %v529_v40 = vadd.f32 %v528_v31, %v527_v20  ;;  %v1116_v2 = vsel %vm1105_vm4, %v517_v63, %v1115_v35  ;;  %v1511_v21 = vunpack.c.l.bf16 %v1603_v12 }
  0xf8   :  { %v546_v52 = vsel %vm426_vm0, %v411_v61, 0.0  ;;  %v539_v59 = vsel %vm426_vm0, %v410_v0, 0.0  ;;  %v415_v24 = vmul.f32 %v1508_v13, %v2173_v50  ;;  %v554_v31 = vrot.slane %v553_v8, 4 }
  0xf9   :  { %v2186_v26 = vpop.permute.xlu2 %366  ;;  %v523_v10 = vrot.slane %v522_v49, 1  ;;  %v530_v18 = vrot.slane %v529_v40, 1  ;;  %v547_v14 = vrot.slane %v546_v52, 4  ;;  %v540_v15 = vrot.slane %v539_v59, 4 }
  0xfa   :  { %v1512_v32 = vunpack.c.h.bf16 %v1603_v12  ;;  %v574_v37 = vsel %vm426_vm0, %v415_v24, 0.0  ;;  %v1524_v24 = vunpack.c.h.bf16 %v1606_v11 }
  0xfb   :  { %v524_v22 = vadd.f32 %v523_v10, %v522_v49  ;;  %v531_v51 = vadd.f32 %v530_v18, %v529_v40  ;;  %v548_v25 = vadd.f32 %v547_v14, %v546_v52  ;;  %v541_v27 = vadd.f32 %v540_v15, %v539_v59  ;;  %v1604_v10 = vld [vmem:[%s2436_s0 + $0x60] sm:$0xff]  }
  0xfc   :  { %v555_v40 = vadd.f32 %v554_v31, %v553_v8  ;;  %v575_v57 = vrot.slane %v574_v37, 4  ;;  %v1516_v56 = vunpack.c.h.bf16 %v1604_v10  ;;  %v1520_v59 = vunpack.c.h.bf16 %v1605_v58 }
  0xfd   :  { %v332_v54 = vpop.permute.xlu0 %331  ;;  %v337_v48 = vpop.permute.xlu1 %336  ;;  %v1117_v5 = vsel %vm1107_vm5, %v524_v22, %v1116_v2  ;;  %v549_v49 = vrot.slane %v548_v25, 2  ;;  %v542_v38 = vrot.slane %v541_v27, 2 }
  0xfe   :  { %v1118_v29 = vsel %vm1109_vm6, %v531_v51, %v1117_v5  ;;  %v413_v23 = vmul.f32 %v1504_v62, %v332_v54  ;;  %v414_v53 = vmul.f32 %v1507_v7, %v337_v48  ;;  %v556_v4 = vrot.slane %v555_v40, 2 }
  0xff   :  { %v1119_v55 = vsel %vm1111_vm7, %v538_v9, %v1118_v29  ;;  %v550_v44 = vadd.f32 %v549_v49, %v548_v25  ;;  %v543_v46 = vadd.f32 %v542_v38, %v541_v27  ;;  %v576_v22 = vadd.f32 %v575_v57, %v574_v37 }
 0x100   :  { %v560_v20 = vsel %vm426_vm0, %v413_v23, 0.0  ;;  %v567_v28 = vsel %vm426_vm0, %v414_v53, 0.0  ;;  %v1515_v48 = vunpack.c.l.bf16 %v1604_v10  ;;  %v557_v62 = vadd.f32 %v556_v4, %v555_v40 }
 0x101   :  { %v2197_v60 = vpop.permute.xlu2 %381  ;;  %v561_v30 = vrot.slane %v560_v20, 4  ;;  %v568_v33 = vrot.slane %v567_v28, 4  ;;  %v551_v35 = vrot.slane %v550_v44, 1  ;;  %v544_v63 = vrot.slane %v543_v46, 1 }
 0x102   :  { %v577_v41 = vrot.slane %v576_v22, 2  ;;  %v558_v14 = vrot.slane %v557_v62, 1  ;;  %v423_v40 = vmul.f32 %v1524_v24, %v2197_v60 }
 0x103   :  { %v562_v39 = vadd.f32 %v561_v30, %v560_v20  ;;  %v569_v47 = vadd.f32 %v568_v33, %v567_v28  ;;  %v552_v7 = vadd.f32 %v551_v35, %v550_v44  ;;  %v1607_v20 = vld [vmem:[%s2436_s0 + $0x78] sm:$0xff]   ;;  %s1663_s0 = smov [#allocation2]  }
 0x104   :  { %v559_v31 = vadd.f32 %v558_v14, %v557_v62  ;;  %s1447_s4 = sshll.u32 %s1663_s0, 4  ;;  %s1448_s4 = int_to_ptr.vmem [resolvable:$true] %s1447_s4 }
 0x105   :  { %v352_v16 = vpop.permute.xlu1 %351  ;;  %v563_v18 = vrot.slane %v562_v39, 2  ;;  %v570_v51 = vrot.slane %v569_v47, 2 }
 0x106   :  { %v347_v3 = vpop.permute.xlu0 %346  ;;  %v417_v42 = vmul.f32 %v1512_v32, %v352_v16  ;;  %v1523_v16 = vunpack.c.l.bf16 %v1606_v11 }
 0x107   :  { %v416_v34 = vmul.f32 %v1511_v21, %v347_v3  ;;  %v564_v61 = vadd.f32 %v563_v18, %v562_v39  ;;  %v545_v3 = vadd.f32 %v544_v63, %v543_v46  ;;  %v571_v29 = vadd.f32 %v570_v51, %v569_v47 }
 0x108   :  { %v588_v54 = vsel %vm426_vm0, %v417_v42, 0.0  ;;  %v1528_v42 = vunpack.c.h.bf16 %v1607_v20 }
 0x109   :  { %v1201_v45 = vpop.permute.xlu2 %1200  ;;  %v581_v43 = vsel %vm426_vm0, %v416_v34, 0.0  ;;  %v589_v0 = vrot.slane %v588_v54, 4  ;;  %v565_v23 = vrot.slane %v564_v61, 1  ;;  %v1120_v21 = vsel %vm1099_vm1, %v552_v7, %v545_v3 }
 0x10a   :  { %v1211_v17 = vsel %vm426_vm0, %v1119_v55, %v1201_v45  ;;  %v582_v19 = vrot.slane %v581_v43, 4  ;;  %v578_v45 = vadd.f32 %v577_v41, %v576_v22  ;;  %v420_v55 = vmul.f32 %v1519_v6, %v2186_v26  ;;  %v1277_v6 = vld [vmem:[%s2442_s6 + $0x68] sm:$0xff] }
 0x10b   :  { %1462 = vmatmul.msk.f32.gmra.mxu0 %vm1222_vm8, %v1211_v17  ;;  %v590_v12 = vadd.f32 %v589_v0, %v588_v54  ;;  %v572_v8 = vrot.slane %v571_v29, 1  ;;  %v566_v25 = vadd.f32 %v565_v23, %v564_v61  ;;  %v1121_v39 = vsel %vm1101_vm2, %v559_v31, %v1120_v21 }
 0x10c   :  { %v583_v2 = vadd.f32 %v582_v19, %v581_v43  ;;  %v579_v26 = vrot.slane %v578_v45, 1  ;;  %v609_v37 = vsel %vm426_vm0, %v420_v55, 0.0 }
 0x10d   :  { %v362_v50 = vpop.permute.xlu1 %361  ;;  %v591_v27 = vrot.slane %v590_v12, 2  ;;  %v573_v33 = vadd.f32 %v572_v8, %v571_v29  ;;  %v1122_v43 = vsel %vm1103_vm3, %v566_v25, %v1121_v39  ;;  %v610_v4 = vrot.slane %v609_v37, 4  ;;  %v1274_v25 = vld [vmem:[%s2442_s6 + $0x50] sm:$0xff]  ;;  %v1271_v39 = vld [vmem:[%s2442_s6 + $0x38] sm:$0xff] }
 0x10e   :  { %v357_v36 = vpop.permute.xlu0 %356  ;;  %v419_v5 = vmul.f32 %v1516_v56, %v362_v50  ;;  %v584_v13 = vrot.slane %v583_v2, 2  ;;  %v580_v54 = vadd.f32 %v579_v26, %v578_v45  ;;  %v630_v56 = vsel %vm426_vm0, %v423_v40, 0.0 }
 0x10f   :  { %v418_v52 = vmul.f32 %v1515_v48, %v357_v36  ;;  %v1527_v36 = vunpack.c.l.bf16 %v1607_v20  ;;  %v592_v50 = vadd.f32 %v591_v27, %v590_v12  ;;  %v1123_v22 = vsel %vm1105_vm4, %v573_v33, %v1122_v43  ;;  %v1276_v12 = vld [vmem:[%s2442_s6 + $0x60] sm:$0xff] }
 0x110   :  { %v602_v15 = vsel %vm426_vm0, %v419_v5, 0.0  ;;  %v585_v28 = vadd.f32 %v584_v13, %v583_v2  ;;  %v1279_v2 = vld [vmem:[%s2442_s6 + $0x78] sm:$0xff]  ;;  %v611_v62 = vadd.f32 %v610_v4, %v609_v37  ;;  %v631_v5 = vrot.slane %v630_v56, 4 }
 0x111   :  { %v595_v53 = vsel %vm426_vm0, %v418_v52, 0.0  ;;  %v603_v30 = vrot.slane %v602_v15, 4  ;;  %v593_v48 = vrot.slane %v592_v50, 1  ;;  %1284 = vmatpush.msra.mxu1 %v1279_v2  ;;  %v1124_v41 = vsel %vm1107_vm5, %v580_v54, %v1123_v22  ;;  %v1268_v22 = vld [vmem:[%s2442_s6 + $0x20] sm:$0xff] }
 0x112   :  { %v596_v32 = vrot.slane %v595_v53, 4  ;;  %v586_v57 = vrot.slane %v585_v28, 1  ;;  %v612_v13 = vrot.slane %v611_v62, 2 }
 0x113   :  { %v604_v10 = vadd.f32 %v603_v30, %v602_v15  ;;  %v594_v52 = vadd.f32 %v593_v48, %v592_v50  ;;  %v1275_v15 = vld [vmem:[%s2442_s6 + $0x58] sm:$0xff]  ;;  %v1273_v30 = vld [vmem:[%s2442_s6 + $0x48] sm:$0xff] }
 0x114   :  { %v597_v44 = vadd.f32 %v596_v32, %v595_v53  ;;  %v587_v60 = vadd.f32 %v586_v57, %v585_v28  ;;  %v613_v27 = vadd.f32 %v612_v13, %v611_v62 }
 0x115   :  { %v377_v9 = vpop.permute.xlu1 %376  ;;  %v605_v58 = vrot.slane %v604_v10, 2 }
 0x116   :  { %v372_v1 = vpop.permute.xlu0 %371  ;;  %v422_v34 = vmul.f32 %v1523_v16, %v377_v9  ;;  %v598_v51 = vrot.slane %v597_v44, 2  ;;  %v1125_v11 = vsel %vm1109_vm6, %v587_v60, %v1124_v41  ;;  %v632_v16 = vadd.f32 %v631_v5, %v630_v56  ;;  %v1267_v60 = vld [vmem:[%s2442_s6 + $0x18] sm:$0xff]  ;;  %v1265_v41 = vld [vmem:[%s2442_s6 + $0x8] sm:$0xff] }
 0x117   :  { %v421_v17 = vmul.f32 %v1520_v59, %v372_v1  ;;  %v1278_v1 = vld [vmem:[%s2442_s6 + $0x70] sm:$0xff]  ;;  %v606_v29 = vadd.f32 %v605_v58, %v604_v10 }
 0x118   :  { %v623_v46 = vsel %vm426_vm0, %v422_v34, 0.0  ;;  %1285 = vmatpush.msra.mxu1 %v1278_v1  ;;  %v599_v9 = vadd.f32 %v598_v51, %v597_v44  ;;  %v633_v34 = vrot.slane %v632_v16, 2  ;;  %v1270_v10 = vld [vmem:[%s2442_s6 + $0x30] sm:$0xff] }
 0x119   :  { %v616_v49 = vsel %vm426_vm0, %v421_v17, 0.0  ;;  %v624_v35 = vrot.slane %v623_v46, 4  ;;  %v1126_v17 = vsel %vm1111_vm7, %v594_v52, %v1125_v11  ;;  %v607_v20 = vrot.slane %v606_v29, 1  ;;  %v1266_v51 = vld [vmem:[%s2442_s6 + $0x10] sm:$0xff]  ;;  %v1631_v52 = vld [vmem:[%s2441_s5] ss:$0 sm:$0xff] }
 0x11a   :  { %v617_v47 = vrot.slane %v616_v49, 4  ;;  %1286 = vmatpush.msra.mxu1 %v1277_v6  ;;  %v600_v21 = vrot.slane %v599_v9, 1  ;;  %v634_v43 = vadd.f32 %v633_v34, %v632_v16  ;;  %v1264_v6 = vld [vmem:[%s2442_s6] sm:$0xff]  ;;  %v1338_v11 = vld [vmem:[%s2444_s8 + $0x68] sm:$0xff]  ;;  %v1335_v16 = vld [vmem:[%s2444_s8 + $0x50] sm:$0xff] }
 0x11b   :  { %v625_v59 = vadd.f32 %v624_v35, %v623_v46 }
 0x11c   :  { %v618_v61 = vadd.f32 %v617_v47, %v616_v49  ;;  %1287 = vmatpush.msra.mxu1 %v1276_v12  ;;  %v601_v26 = vadd.f32 %v600_v21, %v599_v9  ;;  %v1272_v49 = vld [vmem:[%s2442_s6 + $0x40] sm:$0xff]  ;;  %v1269_v47 = vld [vmem:[%s2442_s6 + $0x28] sm:$0xff]  ;;  %v635_v54 = vrot.slane %v634_v43, 1  ;;  %v1340_v9 = vld [vmem:[%s2444_s8 + $0x78] sm:$0xff] }
 0x11d   :  { %v392_v18 = vpop.permute.xlu1 %391  ;;  %v626_v45 = vrot.slane %v625_v59, 2  ;;  %1345 = vmatpush.msra.mxu2 %v1340_v9  ;;  %v1337_v12 = vld [vmem:[%s2444_s8 + $0x60] sm:$0xff] }
 0x11e   :  { %v387_v38 = vpop.permute.xlu0 %386  ;;  %v425_v63 = vmul.f32 %v1528_v42, %v392_v18  ;;  %v619_v23 = vrot.slane %v618_v61, 2  ;;  %1288 = vmatpush.msra.mxu1 %v1275_v15  ;;  %v636_v58 = vadd.f32 %v635_v54, %v634_v43  ;;  %v1329_v21 = vld [vmem:[%s2444_s8 + $0x20] sm:$0xff]  ;;  %v1392_v54 = vld [vmem:[%s2446_s10 + $0x30] sm:$0xff] }
 0x11f   :  { %v424_v19 = vmul.f32 %v1527_v36, %v387_v38  ;;  %v627_v31 = vadd.f32 %v626_v45, %v625_v59  ;;  %v608_v36 = vadd.f32 %v607_v20, %v606_v29  ;;  %v614_v38 = vrot.slane %v613_v27, 1  ;;  %v1334_v45 = vld [vmem:[%s2444_s8 + $0x48] sm:$0xff] }
 0x120   :  { %v644_v7 = vsel %vm426_vm0, %v425_v63, 0.0  ;;  %v620_v8 = vadd.f32 %v619_v23, %v618_v61  ;;  %1289 = vmatpush.msra.mxu1 %v1274_v25  ;;  %v1339_v23 = vld [vmem:[%s2444_s8 + $0x70] sm:$0xff]  ;;  %v1330_v20 = vld [vmem:[%s2444_s8 + $0x28] sm:$0xff] }
 0x121   :  { %v637_v0 = vsel %vm426_vm0, %v424_v19, 0.0  ;;  %v645_v14 = vrot.slane %v644_v7, 4  ;;  %v628_v40 = vrot.slane %v627_v31, 1  ;;  %v1127_v50 = vsel %vm1099_vm1, %v608_v36, %v601_v26  ;;  %1346 = vmatpush.msra.mxu2 %v1339_v23 }
 0x122   :  { %v638_v3 = vrot.slane %v637_v0, 4  ;;  %v621_v37 = vrot.slane %v620_v8, 1  ;;  %1290 = vmatpush.msra.mxu1 %v1273_v30  ;;  %v615_v44 = vadd.f32 %v614_v38, %v613_v27  ;;  %v1327_v27 = vld [vmem:[%s2444_s8 + $0x10] sm:$0xff]  ;;  %v1325_v30 = vld [vmem:[%s2444_s8] sm:$0xff] }
 0x123   :  { %v646_v28 = vadd.f32 %v645_v14, %v644_v7  ;;  %v629_v18 = vadd.f32 %v628_v40, %v627_v31  ;;  %1347 = vmatpush.msra.mxu2 %v1338_v11  ;;  %v1336_v14 = vld [vmem:[%s2444_s8 + $0x58] sm:$0xff]  ;;  %v1632_v31 = vld [vmem:[%s2443_s7] ss:$0 sm:$0xff]  ;;  %v1400_v40 = vld [vmem:[%s2446_s10 + $0x70] sm:$0xff] }
 0x124   :  { %v639_v55 = vadd.f32 %v638_v3, %v637_v0  ;;  %1291 = vmatpush.msra.mxu1 %v1272_v49  ;;  %v622_v57 = vadd.f32 %v621_v37, %v620_v8  ;;  %v1128_v19 = vsel %vm1101_vm2, %v615_v44, %v1127_v50  ;;  %v1328_v8 = vld [vmem:[%s2444_s8 + $0x18] sm:$0xff] }
 0x125   :  { %v647_v33 = vrot.slane %v646_v28, 2  ;;  %1348 = vmatpush.msra.mxu2 %v1337_v12  ;;  %v1397_v44 = vld [vmem:[%s2446_s10 + $0x58] sm:$0xff] }
 0x126   :  { %v640_v32 = vrot.slane %v639_v55, 2  ;;  %1292 = vmatpush.msra.mxu1 %v1271_v39  ;;  %v1129_v56 = vsel %vm1103_vm3, %v622_v57, %v1128_v19  ;;  %v1401_v39 = vld [vmem:[%s2446_s10 + $0x78] sm:$0xff]  ;;  %v1398_v57 = vld [vmem:[%s2446_s10 + $0x60] sm:$0xff] }
 0x127   :  { %v648_v46 = vadd.f32 %v647_v33, %v646_v28  ;;  %v1130_v63 = vsel %vm1105_vm4, %v629_v18, %v1129_v56  ;;  %1349 = vmatpush.msra.mxu2 %v1336_v14  ;;  %v1326_v28 = vld [vmem:[%s2444_s8 + $0x8] sm:$0xff]  ;;  %1406 = vmatpush.msra.mxu3 %v1401_v39  ;;  %v1394_v19 = vld [vmem:[%s2446_s10 + $0x40] sm:$0xff] }
 0x128   :  { %v641_v42 = vadd.f32 %v640_v32, %v639_v55  ;;  %1293 = vmatpush.msra.mxu1 %v1270_v10  ;;  %v1131_v0 = vsel %vm1107_vm5, %v636_v58, %v1130_v63  ;;  %v1333_v55 = vld [vmem:[%s2444_s8 + $0x40] sm:$0xff]  ;;  %v1395_v18 = vld [vmem:[%s2446_s10 + $0x48] sm:$0xff] }
 0x129   :  { %v649_v48 = vrot.slane %v648_v46, 1  ;;  %1350 = vmatpush.msra.mxu2 %v1335_v16  ;;  %1407 = vmatpush.msra.mxu3 %v1400_v40  ;;  %v1391_v56 = vld [vmem:[%s2446_s10 + $0x28] sm:$0xff] }
 0x12a   :  { %v642_v4 = vrot.slane %v641_v42, 1  ;;  %1294 = vmatpush.msra.mxu1 %v1269_v47  ;;  %v1396_v47 = vld [vmem:[%s2446_s10 + $0x50] sm:$0xff] }
 0x12b   :  { %v650_v61 = vadd.f32 %v649_v48, %v648_v46  ;;  %1351 = vmatpush.msra.mxu2 %v1334_v45  ;;  %v1389_v48 = vld [vmem:[%s2446_s10 + $0x18] sm:$0xff] }
 0x12c   :  { %v643_v35 = vadd.f32 %v642_v4, %v641_v42  ;;  %1295 = vmatpush.msra.mxu1 %v1268_v22  ;;  %v1399_v42 = vld [vmem:[%s2446_s10 + $0x68] sm:$0xff]  ;;  %v1393_v4 = vld [vmem:[%s2446_s10 + $0x38] sm:$0xff]  ;;  %v1390_v22 = vld [vmem:[%s2446_s10 + $0x20] sm:$0xff] }
 0x12d   :  { %1352 = vmatpush.msra.mxu2 %v1333_v55  ;;  %1408 = vmatpush.msra.mxu3 %v1399_v42  ;;  %v1634_v55 = vld [vmem:[%s2447_s11] ss:$0 sm:$0xff]  ;;  %s1449_s11 = sshll.u32 %s2448_s12, 4  ;;  %s1450_s11 = int_to_ptr.hbm [resolvable:$true] %s1449_s11 }
 0x12e   :  { %1296 = vmatpush.msra.mxu1 %v1267_v60  ;;  %v1132_v2 = vsel %vm1109_vm6, %v643_v35, %v1131_v0  ;;  %v1386_v0 = vld [vmem:[%s2446_s10] sm:$0xff] }
 0x12f   :  { %v1133_v62 = vsel %vm1111_vm7, %v650_v61, %v1132_v2  ;;  %1409 = vmatpush.msra.mxu3 %v1398_v57  ;;  %v1387_v61 = vld [vmem:[%s2446_s10 + $0x8] sm:$0xff]  ;;  %v1633_v2 = vld [vmem:[%s2445_s9] ss:$0 sm:$0xff] }
 0x130   :  { %1297 = vmatpush.msra.mxu1 %v1266_v51  ;;  %v1388_v51 = vld [vmem:[%s2446_s10 + $0x10] sm:$0xff] }
 0x131   :  { %1410 = vmatpush.msra.mxu3 %v1397_v44 }
 0x132   :  { %v1203_v53 = vpop.permute.xlu0 %1202  ;;  %1298 = vmatpush.msra.mxu1 %v1265_v41 }
 0x133   :  { %v1212_v24 = vsel %vm426_vm0, %v1126_v17, %v1203_v53  ;;  %v1332_v53 = vld [vmem:[%s2444_s8 + $0x38] sm:$0xff]  ;;  %v1331_v17 = vld [vmem:[%s2444_s8 + $0x30] sm:$0xff]  ;;  %1411 = vmatpush.msra.mxu3 %v1396_v47 }
 0x134   :  { %1463 = vmatmul.msk.f32.gmra.mxu0 %vm1222_vm8, %v1212_v24  ;;  %1299 = vmatpush.msra.mxu1 %v1264_v6 }
 0x135   :  { %1353 = vmatpush.msra.mxu2 %v1332_v53  ;;  %1412 = vmatpush.msra.mxu3 %v1395_v18 }
 0x137   :  { %1354 = vmatpush.msra.mxu2 %v1331_v17  ;;  %1413 = vmatpush.msra.mxu3 %v1394_v19 }
 0x139   :  { %1355 = vmatpush.msra.mxu2 %v1330_v20  ;;  %1414 = vmatpush.msra.mxu3 %v1393_v4 }
 0x13b   :  { %1356 = vmatpush.msra.mxu2 %v1329_v21  ;;  %1415 = vmatpush.msra.mxu3 %v1392_v54 }
 0x13d   :  { %1357 = vmatpush.msra.mxu2 %v1328_v8  ;;  %1416 = vmatpush.msra.mxu3 %v1391_v56 }
 0x13f   :  { %1358 = vmatpush.msra.mxu2 %v1327_v27  ;;  %1417 = vmatpush.msra.mxu3 %v1390_v22 }
 0x141   :  { %1359 = vmatpush.msra.mxu2 %v1326_v28  ;;  %1418 = vmatpush.msra.mxu3 %v1389_v48 }
 0x143   :  { %1360 = vmatpush.msra.mxu2 %v1325_v30  ;;  %1419 = vmatpush.msra.mxu3 %v1388_v51 }
 0x145   :  { %1420 = vmatpush.msra.mxu3 %v1387_v61 }
 0x147   :  { %1421 = vmatpush.msra.mxu3 %v1386_v0 }
 0x149   :  { %v1205_v1 = vpop.permute.xlu1 %1204 }
 0x14a   :  { %v1213_v5 = vsel %vm426_vm0, %v1133_v62, %v1205_v1 }
 0x14b   :  { %1464 = vmatmul.msk.f32.gmra.mxu0 %vm1222_vm8, %v1213_v5 }
 0x170   :  { %v1252_v59 = vpop.f32.mrf.mxu0 }
 0x171   :  { %v2312_v7 = vadd.f32 %v1631_v52, %v1252_v59 }
 0x173   :  { %1300 = vmatmul.f32.vlgmr.msra.gmra.mxu1 %v2312_v7 }
 0x188   :  { %v1255_v3 = vpop.f32.mrf.mxu0 }
 0x189   :  { %v2315_v29 = vadd.f32 %v1631_v52, %v1255_v3 }
 0x18b   :  { %1303 = vmatmul.f32.gmra.mxu1 %v2315_v29 }
 0x1b1   :  { %v1258_v13 = vpop.f32.mrf.mxu0 }
 0x1b2   :  { %v2333_v15 = vadd.f32 %v1631_v52, %v1258_v13 }
 0x1b4   :  { %1306 = vmatmul.f32.gmra.mxu1 %v2333_v15 }
 0x1c8   :  { %v1261_v24 = vpop.f32.mrf.mxu0 }
 0x1c9   :  { %v2360_v25 = vadd.f32 %v1631_v52, %v1261_v24 }
 0x1cb   :  { %1309 = vmatmul.f32.gmra.mxu1 %v2360_v25 }
 0x1f0   :  { %v1301_v32 = vpop.f32.mrf.mxu1 }
 0x1f1   :  { %v1302_v34 = vadd.f32 %v1632_v31, %v1301_v32 }
 0x1f3   :  { %vm1313_vm9 = vcmp.gt.f32.partialorder %v1302_v34, 0.0  ;;  %v1317_v36 = vmul.f32 0.2, %v1302_v34 }
 0x1f5   :  { %v1321_v26 = vsel %vm1313_vm9, %v1302_v34, %v1317_v36 }
 0x1f6   :  { %1361 = vmatmul.f32.vlgmr.msra.gmra.mxu2 %v1321_v26 }
 0x208   :  { %v1304_v37 = vpop.f32.mrf.mxu1 }
 0x209   :  { %v1305_v49 = vadd.f32 %v1632_v31, %v1304_v37 }
 0x20b   :  { %vm1314_vm10 = vcmp.gt.f32.partialorder %v1305_v49, 0.0  ;;  %v1318_v38 = vmul.f32 0.2, %v1305_v49 }
 0x20d   :  { %v1322_v33 = vsel %vm1314_vm10, %v1305_v49, %v1318_v38 }
 0x20e   :  { %1364 = vmatmul.f32.gmra.mxu2 %v1322_v33 }
 0x231   :  { %v1307_v43 = vpop.f32.mrf.mxu1 }
 0x232   :  { %v1308_v50 = vadd.f32 %v1632_v31, %v1307_v43 }
 0x234   :  { %vm1315_vm11 = vcmp.gt.f32.partialorder %v1308_v50, 0.0  ;;  %v1319_v10 = vmul.f32 0.2, %v1308_v50 }
 0x236   :  { %v1323_v46 = vsel %vm1315_vm11, %v1308_v50, %v1319_v10 }
 0x237   :  { %1367 = vmatmul.f32.gmra.mxu2 %v1323_v46 }
 0x248   :  { %v1310_v60 = vpop.f32.mrf.mxu1 }
 0x249   :  { %v1311_v35 = vadd.f32 %v1632_v31, %v1310_v60 }
 0x24b   :  { %vm1316_vm12 = vcmp.gt.f32.partialorder %v1311_v35, 0.0  ;;  %v1320_v63 = vmul.f32 0.2, %v1311_v35 }
 0x24d   :  { %v1324_v58 = vsel %vm1316_vm12, %v1311_v35, %v1320_v63 }
 0x24e   :  { %1370 = vmatmul.f32.gmra.mxu2 %v1324_v58 }
 0x279   :  { %v1362_v1 = vpop.f32.mrf.mxu2 }
 0x27a   :  { %v1363_v62 = vadd.f32 %v1633_v2, %v1362_v1 }
 0x27c   :  { %vm1374_vm13 = vcmp.gt.f32.partialorder %v1363_v62, 0.0  ;;  %v1378_v5 = vmul.f32 0.2, %v1363_v62 }
 0x27e   :  { %v1382_v41 = vsel %vm1374_vm13, %v1363_v62, %v1378_v5 }
 0x27f   :  { %1422 = vmatmul.f32.vlgmr.msra.gmra.mxu3 %v1382_v41 }
 0x291   :  { %v1365_v6 = vpop.f32.mrf.mxu2 }
 0x292   :  { %v1366_v52 = vadd.f32 %v1633_v2, %v1365_v6 }
 0x294   :  { %vm1375_vm14 = vcmp.gt.f32.partialorder %v1366_v52, 0.0  ;;  %v1379_v59 = vmul.f32 0.2, %v1366_v52 }
 0x296   :  { %v1383_v3 = vsel %vm1375_vm14, %v1366_v52, %v1379_v59 }
 0x297   :  { %1425 = vmatmul.f32.gmra.mxu3 %v1383_v3 }
 0x2ba   :  { %v1368_v9 = vpop.f32.mrf.mxu2 }
 0x2bb   :  { %v1369_v23 = vadd.f32 %v1633_v2, %v1368_v9 }
 0x2bd   :  { %vm1376_vm15 = vcmp.gt.f32.partialorder %v1369_v23, 0.0  ;;  %v1380_v11 = vmul.f32 0.2, %v1369_v23 }
 0x2bf   :  { %v1384_v12 = vsel %vm1376_vm15, %v1369_v23, %v1380_v11 }
 0x2c0   :  { %1428 = vmatmul.f32.gmra.mxu3 %v1384_v12 }
 0x2d1   :  { %v1371_v13 = vpop.f32.mrf.mxu2 }
 0x2d2   :  { %v1372_v14 = vadd.f32 %v1633_v2, %v1371_v13 }
 0x2d4   :  { %vm1377_vm0 = vcmp.gt.f32.partialorder %v1372_v14, 0.0  ;;  %v1381_v16 = vmul.f32 0.2, %v1372_v14 }
 0x2d6   :  { %v1385_v45 = vsel %vm1377_vm0, %v1372_v14, %v1381_v16 }
 0x2d7   :  { %1431 = vmatmul.f32.gmra.mxu3 %v1385_v45 }
 0x302   :  { %v1423_v53 = vpop.f32.mrf.mxu3 }
 0x303   :  { %v1424_v17 = vadd.f32 %v1634_v55, %v1423_v53 }
 0x305   :  { %v1435_v20 = vadd.f32 %v1424_v17, %v2312_v7 }
 0x307   :  { %1439 = vst [vmem:[#allocation2] sm:$0xff] %v1435_v20 }
 0x31a   :  { %v1426_v21 = vpop.f32.mrf.mxu3 }
 0x31b   :  { %v1427_v8 = vadd.f32 %v1634_v55, %v1426_v21 }
 0x31d   :  { %v1436_v24 = vadd.f32 %v1427_v8, %v2315_v29 }
 0x31f   :  { %1440 = vst [vmem:[#allocation2 + $0x8] sm:$0xff] %v1436_v24 }
 0x343   :  { %v1429_v27 = vpop.f32.mrf.mxu3 }
 0x344   :  { %v1430_v28 = vadd.f32 %v1634_v55, %v1429_v27 }
 0x346   :  { %v1437_v30 = vadd.f32 %v1430_v28, %v2333_v15 }
 0x348   :  { %1441 = vst [vmem:[#allocation2 + $0x10] sm:$0xff] %v1437_v30 }
 0x35a   :  { %v1432_v31 = vpop.f32.mrf.mxu3 }
 0x35b   :  { %v1433_v32 = vadd.f32 %v1634_v55, %v1432_v31 }
 0x35d   :  { %v1438_v7 = vadd.f32 %v1433_v32, %v2360_v25 }
 0x35f   :  { %1442 = vst [vmem:[#allocation2 + $0x18] sm:$0xff] %v1438_v7 }
 0x360   :  { %1455 = dma.vmem_to_hbm [thread:$0]  %s1448_s4, 512, %s1450_s11, [#allocation3], %s1664_s14, %s1664_s14, %s1665_s15  }
 0x361   :  { %1659 = dma.done.wait [#allocation3], 512  }
 0x362   :  { %1660 = vsyncadd [#allocation3], 4294966784 }
 0x363   :  { %1460 = vsyncpa [#allocation3], 1 }

</bundles_post_ra>
